<compile_context>
chip_gen: v7x
topology: tpu7x:2x2x1
jax: 0.10.0
libtpu: 0.0.40
codegen_flags: <defaults>
</compile_context>

<pallas_src>
import math
from itertools import accumulate

import jax
import jax.numpy as jnp
from jax import lax
from jax.experimental import pallas as pl
from jax.experimental.pallas import tpu as pltpu

# ----------------------------- model config ---------------------------------
MORPHO_DIM = 8          # args.morpho_dim_hidden
STEM_DIM = 32           # args.stem_dim_hidden
HIDDEN = MORPHO_DIM * 4 + STEM_DIM          # 64
NUM_HEADS = 4           # args.main_sequence_encoder_num_heads
HEAD_DIM = HIDDEN // NUM_HEADS              # 16
FFN_DIM = 128           # args.main_sequence_encoder_dim_ffn
NUM_LAYERS = 2          # args.main_sequence_encoder_num_layers
NUM_CLASSES = 3
CLS_INNER = NUM_CLASSES * 8                 # 24
OUT_PAD = 128           # lane-dense padded logits width (sliced on host)
N_STEMS = 50            # cfg.tot_num_stems
N_POS = 20
N_LM_MORPHS = 30
N_AFFIXES = 40
MAX_REL = 64            # rel-pos bins
NEG_INF = -1e9

# ----------------------------- fused Pallas kernel ---------------------------

def _mm(a, w_bf16):
    """Matmul: bf16 activations x bf16 (pre-cast) weights, f32 accumulation."""
    return jnp.dot(a.astype(jnp.bfloat16), w_bf16,
                   preferred_element_type=jnp.float32)


def _layernorm(x, g, b, eps=1e-5):
    mu = jnp.mean(x, axis=-1, keepdims=True)
    xc = x - mu
    var = jnp.mean(xc * xc, axis=-1, keepdims=True)
    return xc * lax.rsqrt(var + eps) * g + b


def _fused_gpt_kernel(lens_ref,            # SMEM (B,) int32 sequence lengths
                      x_ref,               # (B*S, HIDDEN) flattened decoder input
                      bias_ref,            # (NH, S, S) rel-pos + causal bias
                      wqkv_ref, bqkv_ref,  # (L, H, 3H) bf16, (L, 1, 3H) f32
                      wo_ref, bo_ref,      # (L, H, H) bf16,  (L, 1, H) f32
                      ln1_g_ref, ln1_b_ref,
                      w1_ref, b1_ref,      # (L, H, FFN) bf16, (L, 1, FFN) f32
                      w2_ref, b2_ref,      # (L, FFN, H) bf16, (L, 1, H) f32
                      ln2_g_ref, ln2_b_ref,
                      cls_dw_ref, cls_db_ref, cls_ow_ref, cls_ob_ref,
                      out_ref,             # (B, OUT_PAD) lane-dense logits
                      x_scratch):          # VMEM (B*S, HIDDEN) f32 scratch
    BS, H = x_ref.shape
    NH, S, _ = bias_ref.shape
    B = BS // S
    HD = H // NH
    NL = wqkv_ref.shape[0]
    scale = 1.0 / math.sqrt(HD)

    # ---- attention bias, composed ONCE per kernel (hoisted out of layer loop)
    # key-padding mask: pad positions + EOS (input_with_eos=True) masked as keys.
    key_ids = lax.broadcasted_iota(jnp.int32, (1, S), 1)            # (1, S)
    base_bias = bias_ref[...]                                       # (NH, S, S)
    bias_blocks = []
    for b in range(B):                                              # tiny static loop
        L_b = lens_ref[b]
        pad = jnp.logical_or(key_ids >= L_b, key_ids == L_b - 1)
        kb = jnp.where(pad, NEG_INF, 0.0)                           # (1, S)
        bias_blocks.append(base_bias + kb[None, :, :])              # (NH, S, S)
    bias_z = jnp.concatenate(bias_blocks, axis=0)                   # (B*NH, S, S)

    def split_heads(mat, col0):
        # (B*S, 3H) slab -> (B*NH, S, HD) via static slices + leading-dim stack.
        return jnp.stack(
            [mat[b * S:(b + 1) * S, col0 + h * HD: col0 + (h + 1) * HD]
             for b in range(B) for h in range(NH)], axis=0)

    x = x_ref[...].astype(jnp.float32)                              # (B*S, H)

    for l in range(NL):                                             # static unroll
        # ---- fused QKV projection ONCE over the whole flattened batch ----
        qkv = _mm(x, wqkv_ref[l]) + bqkv_ref[l]                     # (B*S, 3H)
        q_z = split_heads(qkv, 0)                                   # (Z, S, HD)
        k_z = split_heads(qkv, H)
        v_z = split_heads(qkv, 2 * H)

        # ---- attention for ALL (batch, head) pairs in two batched einsums ----
        s = jnp.einsum('zqd,zkd->zqk',
                       q_z.astype(jnp.bfloat16), k_z.astype(jnp.bfloat16),
                       preferred_element_type=jnp.float32) * scale + bias_z
        m = jnp.max(s, axis=-1, keepdims=True)
        p = jnp.exp(s - m)
        denom = jnp.sum(p, axis=-1, keepdims=True)
        o_z = jnp.einsum('zqk,zkd->zqd',
                         p.astype(jnp.bfloat16), v_z.astype(jnp.bfloat16),
                         preferred_element_type=jnp.float32)
        o_z = o_z * pl.reciprocal(denom, approx=True)               # (Z, S, HD)

        # merge heads -> (B*S, H), then ONE full-width O-projection.
        o_all = jnp.concatenate(
            [jnp.concatenate([o_z[b * NH + h] for h in range(NH)], axis=1)
             for b in range(B)], axis=0)                            # (B*S, H)
        attn = _mm(o_all, wo_ref[l]) + bo_ref[l]

        x = _layernorm(x + attn, ln1_g_ref[l], ln1_b_ref[l])
        # TODO(synk): PyTorch F.gelu defaults to exact erf; tanh approximation used here.
        h1 = jax.nn.gelu(_mm(x, w1_ref[l]) + b1_ref[l], approximate=True)
        h2 = _mm(h1, w2_ref[l]) + b2_ref[l]
        x = _layernorm(x + h2, ln2_g_ref[l], ln2_b_ref[l])

    # ---- classification head: EOS pooling via dynamic VMEM row reads ----
    x_scratch[...] = x
    pooled = jnp.concatenate(
        [x_scratch[pl.ds(b * S + lens_ref[b] - 1, 1), :] for b in range(B)],
        axis=0)                                                     # (B, H)
    hc = jnp.tanh(_mm(pooled, cls_dw_ref[...]) + cls_db_ref[...])   # (B, CLS_INNER)
    logits = _mm(hc, cls_ow_ref[...]) + cls_ob_ref[...]             # (B, OUT_PAD)
    out_ref[...] = logits.astype(out_ref.dtype)


def fused_gpt_classifier(lens_arr, dec_input_flat, attn_bias, params):
    BS, H = dec_input_flat.shape
    B = int(lens_arr.shape[0])
    vmem = pl.BlockSpec(memory_space=pltpu.MemorySpace.VMEM)
    smem = pl.BlockSpec(memory_space=pltpu.MemorySpace.SMEM)
    bf16 = lambda w: w.astype(jnp.bfloat16)

    # Pad the output projection to a lane-dense 128-wide slab (sliced on host).
    cls_ow = jnp.zeros((CLS_INNER, OUT_PAD), jnp.float32)
    cls_ow = cls_ow.at[:, :NUM_CLASSES].set(params["cls_out_w"])
    cls_ob = jnp.zeros((1, OUT_PAD), jnp.float32)
    cls_ob = cls_ob.at[:, :NUM_CLASSES].set(params["cls_out_b"])

    out = pl.pallas_call(
        _fused_gpt_kernel,
        out_shape=jax.ShapeDtypeStruct((B, OUT_PAD), jnp.float32),
        in_specs=[smem] + [vmem] * 18,
        out_specs=vmem,
        scratch_shapes=[pltpu.VMEM((BS, H), jnp.float32)],
    )(lens_arr, dec_input_flat, attn_bias,
      bf16(params["wqkv"]), params["bqkv"], bf16(params["wo"]), params["bo"],
      params["ln1_g"], params["ln1_b"],
      bf16(params["w1"]), params["b1"], bf16(params["w2"]), params["b2"],
      params["ln2_g"], params["ln2_b"],
      bf16(params["cls_dense_w"]), params["cls_dense_b"],
      bf16(cls_ow), cls_ob)
    return out[:, :NUM_CLASSES]


# ----------------------------- parameters ------------------------------------

def init_params(key):
    """Deterministic init mimicking init_bert_params (normal std=0.02, zero bias)."""
    def nrm(k, shape, std=0.02):
        return std * jax.random.normal(k, shape, dtype=jnp.float32)

    keys = iter(jax.random.split(key, 32))
    p = {}
    # MorphoEncoder (approximated): 4 per-token summary embeddings.
    p["morpho_stem_emb"] = nrm(next(keys), (N_STEMS, MORPHO_DIM))
    p["morpho_pos_emb"] = nrm(next(keys), (N_POS, MORPHO_DIM))
    p["morpho_lm_emb"] = nrm(next(keys), (N_LM_MORPHS, MORPHO_DIM))
    p["morpho_afx_emb"] = nrm(next(keys), (N_AFFIXES, MORPHO_DIM))
    stem_emb = nrm(next(keys), (N_STEMS, STEM_DIM))
    p["stem_embedding"] = stem_emb.at[0].set(0.0)        # padding_idx=0
    # PositionEncoding: learned relative-position attention bias per head.
    p["rel_pos_bias"] = nrm(next(keys), (NUM_HEADS, 2 * MAX_REL - 1))
    # Transformer decoder layers, stacked along a leading layer axis;
    # wq|wk|wv fused into a single (HIDDEN, 3*HIDDEN) weight per layer.
    p["wqkv"] = nrm(next(keys), (NUM_LAYERS, HIDDEN, 3 * HIDDEN))
    p["bqkv"] = jnp.zeros((NUM_LAYERS, 1, 3 * HIDDEN), jnp.float32)
    p["wo"] = nrm(next(keys), (NUM_LAYERS, HIDDEN, HIDDEN))
    p["bo"] = jnp.zeros((NUM_LAYERS, 1, HIDDEN), jnp.float32)
    p["ln1_g"] = jnp.ones((NUM_LAYERS, 1, HIDDEN), jnp.float32)
    p["ln1_b"] = jnp.zeros((NUM_LAYERS, 1, HIDDEN), jnp.float32)
    p["w1"] = nrm(next(keys), (NUM_LAYERS, HIDDEN, FFN_DIM))
    p["b1"] = jnp.zeros((NUM_LAYERS, 1, FFN_DIM), jnp.float32)
    p["w2"] = nrm(next(keys), (NUM_LAYERS, FFN_DIM, HIDDEN))
    p["b2"] = jnp.zeros((NUM_LAYERS, 1, HIDDEN), jnp.float32)
    p["ln2_g"] = jnp.ones((NUM_LAYERS, 1, HIDDEN), jnp.float32)
    p["ln2_b"] = jnp.zeros((NUM_LAYERS, 1, HIDDEN), jnp.float32)
    # GPTClassificationHead: dense -> tanh -> out_proj (dropout identity at eval).
    p["cls_dense_w"] = nrm(next(keys), (HIDDEN, CLS_INNER))
    p["cls_dense_b"] = jnp.zeros((1, CLS_INNER), jnp.float32)
    p["cls_out_w"] = nrm(next(keys), (CLS_INNER, NUM_CLASSES))
    p["cls_out_b"] = jnp.zeros((1, NUM_CLASSES), jnp.float32)
    return p


# ----------------------------- forward pass ----------------------------------

def mygpt_sequence_classifier_forward(params, lm_morphs, pos_tags, affixes,
                                      tokens_lengths, stems,
                                      input_sequence_lengths):
    """tokens_lengths / input_sequence_lengths are static Python tuples."""
    L = int(stems.shape[0])
    B = len(input_sequence_lengths)
    S = max(input_sequence_lengths)

    # ---- MorphoEncoder (approx): 4 summary vectors per token -> (L, 4*Dm) ----
    # TODO(synk): MorphoEncoder definition not provided; approximated by 4
    # embedding summaries (stem / pos-tag / lm-morph / pooled affixes).
    seg_ids = jnp.array(
        [i for i, t in enumerate(tokens_lengths) for _ in range(t)], jnp.int32)
    afx_vecs = params["morpho_afx_emb"][affixes]                       # (n_afx, Dm)
    afx_sum = jax.ops.segment_sum(afx_vecs, seg_ids, num_segments=L)
    afx_cnt = jax.ops.segment_sum(jnp.ones((affixes.shape[0],), jnp.float32),
                                  seg_ids, num_segments=L)
    afx_pooled = afx_sum / jnp.maximum(afx_cnt, 1.0)[:, None]
    morpho_4 = jnp.stack([params["morpho_stem_emb"][stems],
                          params["morpho_pos_emb"][pos_tags],
                          params["morpho_lm_emb"][lm_morphs],
                          afx_pooled], axis=0)                         # (4, L, Dm)
    morpho_input = jnp.transpose(morpho_4, (1, 0, 2)).reshape(L, 4 * MORPHO_DIM)
    stem_input = params["stem_embedding"][stems]                       # (L, Ds)
    input_sequences = jnp.concatenate([morpho_input, stem_input], 1)   # (L, HIDDEN)

    # ---- pad_sequence as ONE gather, then flatten to (B*S, HIDDEN) -----------
    offsets = [0] + list(accumulate(input_sequence_lengths))
    gather_idx = [[offsets[b] + s if s < input_sequence_lengths[b] else L
                   for s in range(S)] for b in range(B)]
    gather_idx = jnp.array(gather_idx, jnp.int32)                      # (B, S)
    padded_src = jnp.concatenate(
        [input_sequences, jnp.zeros((1, HIDDEN), jnp.float32)], axis=0)
    dec_input_flat = padded_src[gather_idx].reshape(B * S, HIDDEN)     # (B*S, HIDDEN)

    # ---- PositionEncoding bias + causal mask composed on host: (H, S, S) -----
    pos = jnp.arange(S)
    rel = pos[:, None] - pos[None, :] + (MAX_REL - 1)
    rel = jnp.clip(rel, 0, 2 * MAX_REL - 2)                            # guard S > 64
    causal = jnp.where(pos[None, :] <= pos[:, None], 0.0, NEG_INF)     # (S, S)
    attn_bias = params["rel_pos_bias"][:, rel] + causal[None, :, :]    # (NH, S, S)

    lens_arr = jnp.array(input_sequence_lengths, jnp.int32)            # (B,)

    # Key-padding/EOS masks and EOS pooling are built inside the kernel.
    return fused_gpt_classifier(lens_arr, dec_input_flat, attn_bias, params)


_forward_jit = jax.jit(mygpt_sequence_classifier_forward, static_argnums=(4, 6))


# ----------------------------- driver -----------------------------------------

if __name__ == "__main__":
    key = jax.random.PRNGKey(0)
    pkey, k1, k2, k3, k4 = jax.random.split(key, 5)
    params = init_params(pkey)

    input_sequence_lengths = (8, 6)          # B=2, S=8
    L = sum(input_sequence_lengths)          # 14 tokens total
    tokens_lengths = (1, 2, 0, 1, 3, 1, 2, 0, 1, 1, 2, 1, 0, 2)   # per-token affixes
    n_afx = sum(tokens_lengths)              # 17

    stems = jax.random.randint(k1, (L,), 1, N_STEMS, dtype=jnp.int32)
    pos_tags = jax.random.randint(k2, (L,), 0, N_POS, dtype=jnp.int32)
    lm_morphs = jax.random.randint(k3, (L,), 0, N_LM_MORPHS, dtype=jnp.int32)
    affixes = jax.random.randint(k4, (n_afx,), 0, N_AFFIXES, dtype=jnp.int32)

    out = _forward_jit(params, lm_morphs, pos_tags, affixes, tokens_lengths,
                       stems, input_sequence_lengths)
    out = jax.block_until_ready(out)
    assert out.shape == (len(input_sequence_lengths), NUM_CLASSES)
    assert bool(jnp.all(jnp.isfinite(out)))
    print("KERNEL_OK")
</pallas_src>

<mosaic_0001>
module attributes {stable_mosaic.version = 11 : i64} {
  func.func @_fused_gpt_kernel(%arg0: memref<2xi32, #tpu.memory_space<smem>>, %arg1: memref<16x64xf32, #tpu.memory_space<vmem>>, %arg2: memref<4x8x8xf32, #tpu.memory_space<vmem>>, %arg3: memref<2x64x192xbf16, #tpu.memory_space<vmem>>, %arg4: memref<2x1x192xf32, #tpu.memory_space<vmem>>, %arg5: memref<2x64x64xbf16, #tpu.memory_space<vmem>>, %arg6: memref<2x1x64xf32, #tpu.memory_space<vmem>>, %arg7: memref<2x1x64xf32, #tpu.memory_space<vmem>>, %arg8: memref<2x1x64xf32, #tpu.memory_space<vmem>>, %arg9: memref<2x64x128xbf16, #tpu.memory_space<vmem>>, %arg10: memref<2x1x128xf32, #tpu.memory_space<vmem>>, %arg11: memref<2x128x64xbf16, #tpu.memory_space<vmem>>, %arg12: memref<2x1x64xf32, #tpu.memory_space<vmem>>, %arg13: memref<2x1x64xf32, #tpu.memory_space<vmem>>, %arg14: memref<2x1x64xf32, #tpu.memory_space<vmem>>, %arg15: memref<64x24xbf16, #tpu.memory_space<vmem>>, %arg16: memref<1x24xf32, #tpu.memory_space<vmem>>, %arg17: memref<24x128xbf16, #tpu.memory_space<vmem>>, %arg18: memref<1x128xf32, #tpu.memory_space<vmem>>, %arg19: memref<2x128xf32, #tpu.memory_space<vmem>>, %arg20: memref<16x64xf32, #tpu.memory_space<vmem>>) attributes {dimension_semantics = [], scalar_prefetch = 0 : i64, scratch_operands = 1 : i64, tpu.core_type = #tpu.core_type<tc>} {
    %0 = tpu.iota {dimensions = array<i32: 1>} : vector<1x8xi32>
    %c0 = arith.constant 0 : index
    %c0_0 = arith.constant 0 : index
    %c0_1 = arith.constant 0 : index
    %1 = vector.load %arg2[%c0, %c0_0, %c0_1] : memref<4x8x8xf32, #tpu.memory_space<vmem>>, vector<4x8x8xf32>
    %c0_2 = arith.constant 0 : index
    %2 = memref.load %arg0[%c0_2] : memref<2xi32, #tpu.memory_space<smem>>
    %3 = vector.broadcast %2 : i32 to vector<1x8xi32>
    %4 = arith.cmpi sge, %0, %3 : vector<1x8xi32>
    %c1_i32 = arith.constant 1 : i32
    %5 = arith.subi %2, %c1_i32 : i32
    %6 = vector.broadcast %5 : i32 to vector<1x8xi32>
    %7 = arith.cmpi eq, %0, %6 : vector<1x8xi32>
    %8 = arith.ori %4, %7 : vector<1x8xi1>
    %cst = arith.constant -1.000000e+09 : f32
    %cst_3 = arith.constant 0.000000e+00 : f32
    %9 = vector.broadcast %cst : f32 to vector<1x8xf32>
    %10 = vector.broadcast %cst_3 : f32 to vector<1x8xf32>
    %11 = arith.select %8, %9, %10 : vector<1x8xi1>, vector<1x8xf32>
    %12 = vector.shape_cast %11 : vector<1x8xf32> to vector<1x1x8xf32>
    %13 = vector.broadcast %12 : vector<1x1x8xf32> to vector<4x8x8xf32>
    %14 = arith.addf %1, %13 : vector<4x8x8xf32>
    %c1 = arith.constant 1 : index
    %15 = memref.load %arg0[%c1] : memref<2xi32, #tpu.memory_space<smem>>
    %16 = vector.broadcast %15 : i32 to vector<1x8xi32>
    %17 = arith.cmpi sge, %0, %16 : vector<1x8xi32>
    %c1_i32_4 = arith.constant 1 : i32
    %18 = arith.subi %15, %c1_i32_4 : i32
    %19 = vector.broadcast %18 : i32 to vector<1x8xi32>
    %20 = arith.cmpi eq, %0, %19 : vector<1x8xi32>
    %21 = arith.ori %17, %20 : vector<1x8xi1>
    %cst_5 = arith.constant -1.000000e+09 : f32
    %cst_6 = arith.constant 0.000000e+00 : f32
    %22 = vector.broadcast %cst_5 : f32 to vector<1x8xf32>
    %23 = vector.broadcast %cst_6 : f32 to vector<1x8xf32>
    %24 = arith.select %21, %22, %23 : vector<1x8xi1>, vector<1x8xf32>
    %25 = vector.shape_cast %24 : vector<1x8xf32> to vector<1x1x8xf32>
    %26 = vector.broadcast %25 : vector<1x1x8xf32> to vector<4x8x8xf32>
    %27 = arith.addf %1, %26 : vector<4x8x8xf32>
    %28 = tpu.concatenate %14, %27 in 0 : vector<4x8x8xf32>, vector<4x8x8xf32> -> vector<8x8x8xf32>
    %c0_7 = arith.constant 0 : index
    %c0_8 = arith.constant 0 : index
    %29 = vector.load %arg1[%c0_7, %c0_8] : memref<16x64xf32, #tpu.memory_space<vmem>>, vector<16x64xf32>
    %c0_9 = arith.constant 0 : index
    %c0_10 = arith.constant 0 : index
    %c0_11 = arith.constant 0 : index
    %30 = vector.load %arg3[%c0_9, %c0_10, %c0_11] : memref<2x64x192xbf16, #tpu.memory_space<vmem>>, vector<1x64x192xbf16>
    %31 = vector.shape_cast %30 : vector<1x64x192xbf16> to vector<64x192xbf16>
    %32 = arith.truncf %29 : vector<16x64xf32> to vector<16x64xbf16>
    %cst_12 = arith.constant dense<0.000000e+00> : vector<16x192xf32>
    %33 = tpu.matmul %32, %31, %cst_12 {dimension_numbers = #tpu.dot_dimension_numbers<[1], [0], [0], [1], [0, 0, 1, 1], [], []>} : vector<16x64xbf16>, vector<64x192xbf16>, vector<16x192xf32> -> vector<16x192xf32>
    %c0_13 = arith.constant 0 : index
    %c0_14 = arith.constant 0 : index
    %c0_15 = arith.constant 0 : index
    %34 = vector.load %arg4[%c0_13, %c0_14, %c0_15] : memref<2x1x192xf32, #tpu.memory_space<vmem>>, vector<1x1x192xf32>
    %35 = vector.shape_cast %34 : vector<1x1x192xf32> to vector<1x192xf32>
    %36 = vector.broadcast %35 : vector<1x192xf32> to vector<16x192xf32>
    %37 = arith.addf %33, %36 : vector<16x192xf32>
    %38 = vector.extract_strided_slice %37 {offsets = [0, 0], sizes = [8, 16], strides = [1, 1]} : vector<16x192xf32> to vector<8x16xf32>
    %39 = vector.extract_strided_slice %37 {offsets = [0, 16], sizes = [8, 16], strides = [1, 1]} : vector<16x192xf32> to vector<8x16xf32>
    %40 = vector.extract_strided_slice %37 {offsets = [0, 32], sizes = [8, 16], strides = [1, 1]} : vector<16x192xf32> to vector<8x16xf32>
    %41 = vector.extract_strided_slice %37 {offsets = [0, 48], sizes = [8, 16], strides = [1, 1]} : vector<16x192xf32> to vector<8x16xf32>
    %42 = vector.extract_strided_slice %37 {offsets = [8, 0], sizes = [8, 16], strides = [1, 1]} : vector<16x192xf32> to vector<8x16xf32>
    %43 = vector.extract_strided_slice %37 {offsets = [8, 16], sizes = [8, 16], strides = [1, 1]} : vector<16x192xf32> to vector<8x16xf32>
    %44 = vector.extract_strided_slice %37 {offsets = [8, 32], sizes = [8, 16], strides = [1, 1]} : vector<16x192xf32> to vector<8x16xf32>
    %45 = vector.extract_strided_slice %37 {offsets = [8, 48], sizes = [8, 16], strides = [1, 1]} : vector<16x192xf32> to vector<8x16xf32>
    %46 = vector.shape_cast %38 : vector<8x16xf32> to vector<1x8x16xf32>
    %47 = vector.shape_cast %39 : vector<8x16xf32> to vector<1x8x16xf32>
    %48 = vector.shape_cast %40 : vector<8x16xf32> to vector<1x8x16xf32>
    %49 = vector.shape_cast %41 : vector<8x16xf32> to vector<1x8x16xf32>
    %50 = vector.shape_cast %42 : vector<8x16xf32> to vector<1x8x16xf32>
    %51 = vector.shape_cast %43 : vector<8x16xf32> to vector<1x8x16xf32>
    %52 = vector.shape_cast %44 : vector<8x16xf32> to vector<1x8x16xf32>
    %53 = vector.shape_cast %45 : vector<8x16xf32> to vector<1x8x16xf32>
    %54 = tpu.concatenate %46, %47, %48, %49, %50, %51, %52, %53 in 0 : vector<1x8x16xf32>, vector<1x8x16xf32>, vector<1x8x16xf32>, vector<1x8x16xf32>, vector<1x8x16xf32>, vector<1x8x16xf32>, vector<1x8x16xf32>, vector<1x8x16xf32> -> vector<8x8x16xf32>
    %55 = vector.extract_strided_slice %37 {offsets = [0, 64], sizes = [8, 16], strides = [1, 1]} : vector<16x192xf32> to vector<8x16xf32>
    %56 = vector.extract_strided_slice %37 {offsets = [0, 80], sizes = [8, 16], strides = [1, 1]} : vector<16x192xf32> to vector<8x16xf32>
    %57 = vector.extract_strided_slice %37 {offsets = [0, 96], sizes = [8, 16], strides = [1, 1]} : vector<16x192xf32> to vector<8x16xf32>
    %58 = vector.extract_strided_slice %37 {offsets = [0, 112], sizes = [8, 16], strides = [1, 1]} : vector<16x192xf32> to vector<8x16xf32>
    %59 = vector.extract_strided_slice %37 {offsets = [8, 64], sizes = [8, 16], strides = [1, 1]} : vector<16x192xf32> to vector<8x16xf32>
    %60 = vector.extract_strided_slice %37 {offsets = [8, 80], sizes = [8, 16], strides = [1, 1]} : vector<16x192xf32> to vector<8x16xf32>
    %61 = vector.extract_strided_slice %37 {offsets = [8, 96], sizes = [8, 16], strides = [1, 1]} : vector<16x192xf32> to vector<8x16xf32>
    %62 = vector.extract_strided_slice %37 {offsets = [8, 112], sizes = [8, 16], strides = [1, 1]} : vector<16x192xf32> to vector<8x16xf32>
    %63 = vector.shape_cast %55 : vector<8x16xf32> to vector<1x8x16xf32>
    %64 = vector.shape_cast %56 : vector<8x16xf32> to vector<1x8x16xf32>
    %65 = vector.shape_cast %57 : vector<8x16xf32> to vector<1x8x16xf32>
    %66 = vector.shape_cast %58 : vector<8x16xf32> to vector<1x8x16xf32>
    %67 = vector.shape_cast %59 : vector<8x16xf32> to vector<1x8x16xf32>
    %68 = vector.shape_cast %60 : vector<8x16xf32> to vector<1x8x16xf32>
    %69 = vector.shape_cast %61 : vector<8x16xf32> to vector<1x8x16xf32>
    %70 = vector.shape_cast %62 : vector<8x16xf32> to vector<1x8x16xf32>
    %71 = tpu.concatenate %63, %64, %65, %66, %67, %68, %69, %70 in 0 : vector<1x8x16xf32>, vector<1x8x16xf32>, vector<1x8x16xf32>, vector<1x8x16xf32>, vector<1x8x16xf32>, vector<1x8x16xf32>, vector<1x8x16xf32>, vector<1x8x16xf32> -> vector<8x8x16xf32>
    %72 = vector.extract_strided_slice %37 {offsets = [0, 128], sizes = [8, 16], strides = [1, 1]} : vector<16x192xf32> to vector<8x16xf32>
    %73 = vector.extract_strided_slice %37 {offsets = [0, 144], sizes = [8, 16], strides = [1, 1]} : vector<16x192xf32> to vector<8x16xf32>
    %74 = vector.extract_strided_slice %37 {offsets = [0, 160], sizes = [8, 16], strides = [1, 1]} : vector<16x192xf32> to vector<8x16xf32>
    %75 = vector.extract_strided_slice %37 {offsets = [0, 176], sizes = [8, 16], strides = [1, 1]} : vector<16x192xf32> to vector<8x16xf32>
    %76 = vector.extract_strided_slice %37 {offsets = [8, 128], sizes = [8, 16], strides = [1, 1]} : vector<16x192xf32> to vector<8x16xf32>
    %77 = vector.extract_strided_slice %37 {offsets = [8, 144], sizes = [8, 16], strides = [1, 1]} : vector<16x192xf32> to vector<8x16xf32>
    %78 = vector.extract_strided_slice %37 {offsets = [8, 160], sizes = [8, 16], strides = [1, 1]} : vector<16x192xf32> to vector<8x16xf32>
    %79 = vector.extract_strided_slice %37 {offsets = [8, 176], sizes = [8, 16], strides = [1, 1]} : vector<16x192xf32> to vector<8x16xf32>
    %80 = vector.shape_cast %72 : vector<8x16xf32> to vector<1x8x16xf32>
    %81 = vector.shape_cast %73 : vector<8x16xf32> to vector<1x8x16xf32>
    %82 = vector.shape_cast %74 : vector<8x16xf32> to vector<1x8x16xf32>
    %83 = vector.shape_cast %75 : vector<8x16xf32> to vector<1x8x16xf32>
    %84 = vector.shape_cast %76 : vector<8x16xf32> to vector<1x8x16xf32>
    %85 = vector.shape_cast %77 : vector<8x16xf32> to vector<1x8x16xf32>
    %86 = vector.shape_cast %78 : vector<8x16xf32> to vector<1x8x16xf32>
    %87 = vector.shape_cast %79 : vector<8x16xf32> to vector<1x8x16xf32>
    %88 = tpu.concatenate %80, %81, %82, %83, %84, %85, %86, %87 in 0 : vector<1x8x16xf32>, vector<1x8x16xf32>, vector<1x8x16xf32>, vector<1x8x16xf32>, vector<1x8x16xf32>, vector<1x8x16xf32>, vector<1x8x16xf32>, vector<1x8x16xf32> -> vector<8x8x16xf32>
    %89 = arith.truncf %54 : vector<8x8x16xf32> to vector<8x8x16xbf16>
    %90 = arith.truncf %71 : vector<8x8x16xf32> to vector<8x8x16xbf16>
    "tpu.trace_start"() <{level = 10 : i32, message = "zqd,zkd->zqk"}> : () -> ()
    %cst_16 = arith.constant dense<0.000000e+00> : vector<8x8x8xf32>
    %91 = tpu.matmul %89, %90, %cst_16 {dimension_numbers = #tpu.dot_dimension_numbers<[2], [2], [1], [1], [0, 0, 0, 1, 1, 1], [0], [0]>} : vector<8x8x16xbf16>, vector<8x8x16xbf16>, vector<8x8x8xf32> -> vector<8x8x8xf32>
    "tpu.trace_stop"() : () -> ()
    %cst_17 = arith.constant 2.500000e-01 : f32
    %92 = vector.broadcast %cst_17 : f32 to vector<8x8x8xf32>
    %93 = arith.mulf %91, %92 : vector<8x8x8xf32>
    %94 = arith.addf %93, %28 : vector<8x8x8xf32>
    %cst_18 = arith.constant dense<0xFF800000> : vector<8x8xf32>
    %95 = vector.multi_reduction <maximumf>, %94, %cst_18 [2] : vector<8x8x8xf32> to vector<8x8xf32>
    %96 = vector.shape_cast %95 : vector<8x8xf32> to vector<8x8x1xf32>
    %97 = vector.broadcast %96 : vector<8x8x1xf32> to vector<8x8x8xf32>
    %98 = arith.subf %94, %97 : vector<8x8x8xf32>
    %99 = math.exp %98 : vector<8x8x8xf32>
    %cst_19 = arith.constant dense<0.000000e+00> : vector<8x8xf32>
    %100 = vector.multi_reduction <add>, %99, %cst_19 [2] : vector<8x8x8xf32> to vector<8x8xf32>
    %101 = vector.shape_cast %100 : vector<8x8xf32> to vector<8x8x1xf32>
    %102 = arith.truncf %99 : vector<8x8x8xf32> to vector<8x8x8xbf16>
    %103 = arith.truncf %88 : vector<8x8x16xf32> to vector<8x8x16xbf16>
    "tpu.trace_start"() <{level = 10 : i32, message = "zqk,zkd->zqd"}> : () -> ()
    %cst_20 = arith.constant dense<0.000000e+00> : vector<8x8x16xf32>
    %104 = tpu.matmul %102, %103, %cst_20 {dimension_numbers = #tpu.dot_dimension_numbers<[2], [1], [1], [2], [0, 0, 0, 1, 1, 2], [0], [0]>} : vector<8x8x8xbf16>, vector<8x8x16xbf16>, vector<8x8x16xf32> -> vector<8x8x16xf32>
    "tpu.trace_stop"() : () -> ()
    %105 = tpu.reciprocal %101 {approx = true} : vector<8x8x1xf32> -> vector<8x8x1xf32>
    %106 = vector.broadcast %105 : vector<8x8x1xf32> to vector<8x8x16xf32>
    %107 = arith.mulf %104, %106 : vector<8x8x16xf32>
    %108 = vector.extract_strided_slice %107 {offsets = [0, 0, 0], sizes = [1, 8, 16], strides = [1, 1, 1]} : vector<8x8x16xf32> to vector<1x8x16xf32>
    %109 = vector.shape_cast %108 : vector<1x8x16xf32> to vector<8x16xf32>
    %110 = vector.extract_strided_slice %107 {offsets = [1, 0, 0], sizes = [1, 8, 16], strides = [1, 1, 1]} : vector<8x8x16xf32> to vector<1x8x16xf32>
    %111 = vector.shape_cast %110 : vector<1x8x16xf32> to vector<8x16xf32>
    %112 = vector.extract_strided_slice %107 {offsets = [2, 0, 0], sizes = [1, 8, 16], strides = [1, 1, 1]} : vector<8x8x16xf32> to vector<1x8x16xf32>
    %113 = vector.shape_cast %112 : vector<1x8x16xf32> to vector<8x16xf32>
    %114 = vector.extract_strided_slice %107 {offsets = [3, 0, 0], sizes = [1, 8, 16], strides = [1, 1, 1]} : vector<8x8x16xf32> to vector<1x8x16xf32>
    %115 = vector.shape_cast %114 : vector<1x8x16xf32> to vector<8x16xf32>
    %116 = tpu.concatenate %109, %111, %113, %115 in 1 : vector<8x16xf32>, vector<8x16xf32>, vector<8x16xf32>, vector<8x16xf32> -> vector<8x64xf32>
    %117 = vector.extract_strided_slice %107 {offsets = [4, 0, 0], sizes = [1, 8, 16], strides = [1, 1, 1]} : vector<8x8x16xf32> to vector<1x8x16xf32>
    %118 = vector.shape_cast %117 : vector<1x8x16xf32> to vector<8x16xf32>
    %119 = vector.extract_strided_slice %107 {offsets = [5, 0, 0], sizes = [1, 8, 16], strides = [1, 1, 1]} : vector<8x8x16xf32> to vector<1x8x16xf32>
    %120 = vector.shape_cast %119 : vector<1x8x16xf32> to vector<8x16xf32>
    %121 = vector.extract_strided_slice %107 {offsets = [6, 0, 0], sizes = [1, 8, 16], strides = [1, 1, 1]} : vector<8x8x16xf32> to vector<1x8x16xf32>
    %122 = vector.shape_cast %121 : vector<1x8x16xf32> to vector<8x16xf32>
    %123 = vector.extract_strided_slice %107 {offsets = [7, 0, 0], sizes = [1, 8, 16], strides = [1, 1, 1]} : vector<8x8x16xf32> to vector<1x8x16xf32>
    %124 = vector.shape_cast %123 : vector<1x8x16xf32> to vector<8x16xf32>
    %125 = tpu.concatenate %118, %120, %122, %124 in 1 : vector<8x16xf32>, vector<8x16xf32>, vector<8x16xf32>, vector<8x16xf32> -> vector<8x64xf32>
    %126 = tpu.concatenate %116, %125 in 0 : vector<8x64xf32>, vector<8x64xf32> -> vector<16x64xf32>
    %c0_21 = arith.constant 0 : index
    %c0_22 = arith.constant 0 : index
    %c0_23 = arith.constant 0 : index
    %127 = vector.load %arg5[%c0_21, %c0_22, %c0_23] : memref<2x64x64xbf16, #tpu.memory_space<vmem>>, vector<1x64x64xbf16>
    %128 = vector.shape_cast %127 : vector<1x64x64xbf16> to vector<64x64xbf16>
    %129 = arith.truncf %126 : vector<16x64xf32> to vector<16x64xbf16>
    %cst_24 = arith.constant dense<0.000000e+00> : vector<16x64xf32>
    %130 = tpu.matmul %129, %128, %cst_24 {dimension_numbers = #tpu.dot_dimension_numbers<[1], [0], [0], [1], [0, 0, 1, 1], [], []>} : vector<16x64xbf16>, vector<64x64xbf16>, vector<16x64xf32> -> vector<16x64xf32>
    %c0_25 = arith.constant 0 : index
    %c0_26 = arith.constant 0 : index
    %c0_27 = arith.constant 0 : index
    %131 = vector.load %arg6[%c0_25, %c0_26, %c0_27] : memref<2x1x64xf32, #tpu.memory_space<vmem>>, vector<1x1x64xf32>
    %132 = vector.shape_cast %131 : vector<1x1x64xf32> to vector<1x64xf32>
    %133 = vector.broadcast %132 : vector<1x64xf32> to vector<16x64xf32>
    %134 = arith.addf %130, %133 : vector<16x64xf32>
    %135 = arith.addf %29, %134 : vector<16x64xf32>
    %c0_28 = arith.constant 0 : index
    %c0_29 = arith.constant 0 : index
    %c0_30 = arith.constant 0 : index
    %136 = vector.load %arg7[%c0_28, %c0_29, %c0_30] : memref<2x1x64xf32, #tpu.memory_space<vmem>>, vector<1x1x64xf32>
    %137 = vector.shape_cast %136 : vector<1x1x64xf32> to vector<1x64xf32>
    %c0_31 = arith.constant 0 : index
    %c0_32 = arith.constant 0 : index
    %c0_33 = arith.constant 0 : index
    %138 = vector.load %arg8[%c0_31, %c0_32, %c0_33] : memref<2x1x64xf32, #tpu.memory_space<vmem>>, vector<1x1x64xf32>
    %139 = vector.shape_cast %138 : vector<1x1x64xf32> to vector<1x64xf32>
    %cst_34 = arith.constant dense<0.000000e+00> : vector<16xf32>
    %140 = vector.multi_reduction <add>, %135, %cst_34 [1] : vector<16x64xf32> to vector<16xf32>
    %141 = vector.shape_cast %140 : vector<16xf32> to vector<16x1xf32>
    %cst_35 = arith.constant 6.400000e+01 : f32
    %142 = vector.broadcast %cst_35 : f32 to vector<16x1xf32>
    %143 = arith.divf %141, %142 : vector<16x1xf32>
    %144 = vector.broadcast %143 : vector<16x1xf32> to vector<16x64xf32>
    %145 = arith.subf %135, %144 : vector<16x64xf32>
    %146 = arith.mulf %145, %145 : vector<16x64xf32>
    %cst_36 = arith.constant dense<0.000000e+00> : vector<16xf32>
    %147 = vector.multi_reduction <add>, %146, %cst_36 [1] : vector<16x64xf32> to vector<16xf32>
    %148 = vector.shape_cast %147 : vector<16xf32> to vector<16x1xf32>
    %cst_37 = arith.constant 6.400000e+01 : f32
    %149 = vector.broadcast %cst_37 : f32 to vector<16x1xf32>
    %150 = arith.divf %148, %149 : vector<16x1xf32>
    %cst_38 = arith.constant 9.99999974E-6 : f32
    %151 = vector.broadcast %cst_38 : f32 to vector<16x1xf32>
    %152 = arith.addf %150, %151 : vector<16x1xf32>
    %153 = math.rsqrt %152 : vector<16x1xf32>
    %154 = vector.broadcast %153 : vector<16x1xf32> to vector<16x64xf32>
    %155 = arith.mulf %145, %154 : vector<16x64xf32>
    %156 = vector.broadcast %137 : vector<1x64xf32> to vector<16x64xf32>
    %157 = arith.mulf %155, %156 : vector<16x64xf32>
    %158 = vector.broadcast %139 : vector<1x64xf32> to vector<16x64xf32>
    %159 = arith.addf %157, %158 : vector<16x64xf32>
    %c0_39 = arith.constant 0 : index
    %c0_40 = arith.constant 0 : index
    %c0_41 = arith.constant 0 : index
    %160 = vector.load %arg9[%c0_39, %c0_40, %c0_41] : memref<2x64x128xbf16, #tpu.memory_space<vmem>>, vector<1x64x128xbf16>
    %161 = vector.shape_cast %160 : vector<1x64x128xbf16> to vector<64x128xbf16>
    %162 = arith.truncf %159 : vector<16x64xf32> to vector<16x64xbf16>
    %cst_42 = arith.constant dense<0.000000e+00> : vector<16x128xf32>
    %163 = tpu.matmul %162, %161, %cst_42 {dimension_numbers = #tpu.dot_dimension_numbers<[1], [0], [0], [1], [0, 0, 1, 1], [], []>} : vector<16x64xbf16>, vector<64x128xbf16>, vector<16x128xf32> -> vector<16x128xf32>
    %c0_43 = arith.constant 0 : index
    %c0_44 = arith.constant 0 : index
    %c0_45 = arith.constant 0 : index
    %164 = vector.load %arg10[%c0_43, %c0_44, %c0_45] : memref<2x1x128xf32, #tpu.memory_space<vmem>>, vector<1x1x128xf32>
    %165 = vector.shape_cast %164 : vector<1x1x128xf32> to vector<1x128xf32>
    %166 = vector.broadcast %165 : vector<1x128xf32> to vector<16x128xf32>
    %167 = arith.addf %163, %166 : vector<16x128xf32>
    %168 = arith.mulf %167, %167 : vector<16x128xf32>
    %169 = arith.mulf %167, %168 : vector<16x128xf32>
    %cst_46 = arith.constant 4.471500e-02 : f32
    %170 = vector.broadcast %cst_46 : f32 to vector<16x128xf32>
    %171 = arith.mulf %170, %169 : vector<16x128xf32>
    %172 = arith.addf %167, %171 : vector<16x128xf32>
    %cst_47 = arith.constant 0.797884583 : f32
    %173 = vector.broadcast %cst_47 : f32 to vector<16x128xf32>
    %174 = arith.mulf %173, %172 : vector<16x128xf32>
    %175 = math.tanh %174 : vector<16x128xf32>
    %cst_48 = arith.constant 1.000000e+00 : f32
    %176 = vector.broadcast %cst_48 : f32 to vector<16x128xf32>
    %177 = arith.addf %176, %175 : vector<16x128xf32>
    %cst_49 = arith.constant 5.000000e-01 : f32
    %178 = vector.broadcast %cst_49 : f32 to vector<16x128xf32>
    %179 = arith.mulf %178, %177 : vector<16x128xf32>
    %180 = arith.mulf %167, %179 : vector<16x128xf32>
    %c0_50 = arith.constant 0 : index
    %c0_51 = arith.constant 0 : index
    %c0_52 = arith.constant 0 : index
    %181 = vector.load %arg11[%c0_50, %c0_51, %c0_52] : memref<2x128x64xbf16, #tpu.memory_space<vmem>>, vector<1x128x64xbf16>
    %182 = vector.shape_cast %181 : vector<1x128x64xbf16> to vector<128x64xbf16>
    %183 = arith.truncf %180 : vector<16x128xf32> to vector<16x128xbf16>
    %cst_53 = arith.constant dense<0.000000e+00> : vector<16x64xf32>
    %184 = tpu.matmul %183, %182, %cst_53 {dimension_numbers = #tpu.dot_dimension_numbers<[1], [0], [0], [1], [0, 0, 1, 1], [], []>} : vector<16x128xbf16>, vector<128x64xbf16>, vector<16x64xf32> -> vector<16x64xf32>
    %c0_54 = arith.constant 0 : index
    %c0_55 = arith.constant 0 : index
    %c0_56 = arith.constant 0 : index
    %185 = vector.load %arg12[%c0_54, %c0_55, %c0_56] : memref<2x1x64xf32, #tpu.memory_space<vmem>>, vector<1x1x64xf32>
    %186 = vector.shape_cast %185 : vector<1x1x64xf32> to vector<1x64xf32>
    %187 = vector.broadcast %186 : vector<1x64xf32> to vector<16x64xf32>
    %188 = arith.addf %184, %187 : vector<16x64xf32>
    %189 = arith.addf %159, %188 : vector<16x64xf32>
    %c0_57 = arith.constant 0 : index
    %c0_58 = arith.constant 0 : index
    %c0_59 = arith.constant 0 : index
    %190 = vector.load %arg13[%c0_57, %c0_58, %c0_59] : memref<2x1x64xf32, #tpu.memory_space<vmem>>, vector<1x1x64xf32>
    %191 = vector.shape_cast %190 : vector<1x1x64xf32> to vector<1x64xf32>
    %c0_60 = arith.constant 0 : index
    %c0_61 = arith.constant 0 : index
    %c0_62 = arith.constant 0 : index
    %192 = vector.load %arg14[%c0_60, %c0_61, %c0_62] : memref<2x1x64xf32, #tpu.memory_space<vmem>>, vector<1x1x64xf32>
    %193 = vector.shape_cast %192 : vector<1x1x64xf32> to vector<1x64xf32>
    %cst_63 = arith.constant dense<0.000000e+00> : vector<16xf32>
    %194 = vector.multi_reduction <add>, %189, %cst_63 [1] : vector<16x64xf32> to vector<16xf32>
    %195 = vector.shape_cast %194 : vector<16xf32> to vector<16x1xf32>
    %cst_64 = arith.constant 6.400000e+01 : f32
    %196 = vector.broadcast %cst_64 : f32 to vector<16x1xf32>
    %197 = arith.divf %195, %196 : vector<16x1xf32>
    %198 = vector.broadcast %197 : vector<16x1xf32> to vector<16x64xf32>
    %199 = arith.subf %189, %198 : vector<16x64xf32>
    %200 = arith.mulf %199, %199 : vector<16x64xf32>
    %cst_65 = arith.constant dense<0.000000e+00> : vector<16xf32>
    %201 = vector.multi_reduction <add>, %200, %cst_65 [1] : vector<16x64xf32> to vector<16xf32>
    %202 = vector.shape_cast %201 : vector<16xf32> to vector<16x1xf32>
    %cst_66 = arith.constant 6.400000e+01 : f32
    %203 = vector.broadcast %cst_66 : f32 to vector<16x1xf32>
    %204 = arith.divf %202, %203 : vector<16x1xf32>
    %cst_67 = arith.constant 9.99999974E-6 : f32
    %205 = vector.broadcast %cst_67 : f32 to vector<16x1xf32>
    %206 = arith.addf %204, %205 : vector<16x1xf32>
    %207 = math.rsqrt %206 : vector<16x1xf32>
    %208 = vector.broadcast %207 : vector<16x1xf32> to vector<16x64xf32>
    %209 = arith.mulf %199, %208 : vector<16x64xf32>
    %210 = vector.broadcast %191 : vector<1x64xf32> to vector<16x64xf32>
    %211 = arith.mulf %209, %210 : vector<16x64xf32>
    %212 = vector.broadcast %193 : vector<1x64xf32> to vector<16x64xf32>
    %213 = arith.addf %211, %212 : vector<16x64xf32>
    %c1_68 = arith.constant 1 : index
    %c0_69 = arith.constant 0 : index
    %c0_70 = arith.constant 0 : index
    %214 = vector.load %arg3[%c1_68, %c0_69, %c0_70] : memref<2x64x192xbf16, #tpu.memory_space<vmem>>, vector<1x64x192xbf16>
    %215 = vector.shape_cast %214 : vector<1x64x192xbf16> to vector<64x192xbf16>
    %216 = arith.truncf %213 : vector<16x64xf32> to vector<16x64xbf16>
    %cst_71 = arith.constant dense<0.000000e+00> : vector<16x192xf32>
    %217 = tpu.matmul %216, %215, %cst_71 {dimension_numbers = #tpu.dot_dimension_numbers<[1], [0], [0], [1], [0, 0, 1, 1], [], []>} : vector<16x64xbf16>, vector<64x192xbf16>, vector<16x192xf32> -> vector<16x192xf32>
    %c1_72 = arith.constant 1 : index
    %c0_73 = arith.constant 0 : index
    %c0_74 = arith.constant 0 : index
    %218 = vector.load %arg4[%c1_72, %c0_73, %c0_74] : memref<2x1x192xf32, #tpu.memory_space<vmem>>, vector<1x1x192xf32>
    %219 = vector.shape_cast %218 : vector<1x1x192xf32> to vector<1x192xf32>
    %220 = vector.broadcast %219 : vector<1x192xf32> to vector<16x192xf32>
    %221 = arith.addf %217, %220 : vector<16x192xf32>
    %222 = vector.extract_strided_slice %221 {offsets = [0, 0], sizes = [8, 16], strides = [1, 1]} : vector<16x192xf32> to vector<8x16xf32>
    %223 = vector.extract_strided_slice %221 {offsets = [0, 16], sizes = [8, 16], strides = [1, 1]} : vector<16x192xf32> to vector<8x16xf32>
    %224 = vector.extract_strided_slice %221 {offsets = [0, 32], sizes = [8, 16], strides = [1, 1]} : vector<16x192xf32> to vector<8x16xf32>
    %225 = vector.extract_strided_slice %221 {offsets = [0, 48], sizes = [8, 16], strides = [1, 1]} : vector<16x192xf32> to vector<8x16xf32>
    %226 = vector.extract_strided_slice %221 {offsets = [8, 0], sizes = [8, 16], strides = [1, 1]} : vector<16x192xf32> to vector<8x16xf32>
    %227 = vector.extract_strided_slice %221 {offsets = [8, 16], sizes = [8, 16], strides = [1, 1]} : vector<16x192xf32> to vector<8x16xf32>
    %228 = vector.extract_strided_slice %221 {offsets = [8, 32], sizes = [8, 16], strides = [1, 1]} : vector<16x192xf32> to vector<8x16xf32>
    %229 = vector.extract_strided_slice %221 {offsets = [8, 48], sizes = [8, 16], strides = [1, 1]} : vector<16x192xf32> to vector<8x16xf32>
    %230 = vector.shape_cast %222 : vector<8x16xf32> to vector<1x8x16xf32>
    %231 = vector.shape_cast %223 : vector<8x16xf32> to vector<1x8x16xf32>
    %232 = vector.shape_cast %224 : vector<8x16xf32> to vector<1x8x16xf32>
    %233 = vector.shape_cast %225 : vector<8x16xf32> to vector<1x8x16xf32>
    %234 = vector.shape_cast %226 : vector<8x16xf32> to vector<1x8x16xf32>
    %235 = vector.shape_cast %227 : vector<8x16xf32> to vector<1x8x16xf32>
    %236 = vector.shape_cast %228 : vector<8x16xf32> to vector<1x8x16xf32>
    %237 = vector.shape_cast %229 : vector<8x16xf32> to vector<1x8x16xf32>
    %238 = tpu.concatenate %230, %231, %232, %233, %234, %235, %236, %237 in 0 : vector<1x8x16xf32>, vector<1x8x16xf32>, vector<1x8x16xf32>, vector<1x8x16xf32>, vector<1x8x16xf32>, vector<1x8x16xf32>, vector<1x8x16xf32>, vector<1x8x16xf32> -> vector<8x8x16xf32>
    %239 = vector.extract_strided_slice %221 {offsets = [0, 64], sizes = [8, 16], strides = [1, 1]} : vector<16x192xf32> to vector<8x16xf32>
    %240 = vector.extract_strided_slice %221 {offsets = [0, 80], sizes = [8, 16], strides = [1, 1]} : vector<16x192xf32> to vector<8x16xf32>
    %241 = vector.extract_strided_slice %221 {offsets = [0, 96], sizes = [8, 16], strides = [1, 1]} : vector<16x192xf32> to vector<8x16xf32>
    %242 = vector.extract_strided_slice %221 {offsets = [0, 112], sizes = [8, 16], strides = [1, 1]} : vector<16x192xf32> to vector<8x16xf32>
    %243 = vector.extract_strided_slice %221 {offsets = [8, 64], sizes = [8, 16], strides = [1, 1]} : vector<16x192xf32> to vector<8x16xf32>
    %244 = vector.extract_strided_slice %221 {offsets = [8, 80], sizes = [8, 16], strides = [1, 1]} : vector<16x192xf32> to vector<8x16xf32>
    %245 = vector.extract_strided_slice %221 {offsets = [8, 96], sizes = [8, 16], strides = [1, 1]} : vector<16x192xf32> to vector<8x16xf32>
    %246 = vector.extract_strided_slice %221 {offsets = [8, 112], sizes = [8, 16], strides = [1, 1]} : vector<16x192xf32> to vector<8x16xf32>
    %247 = vector.shape_cast %239 : vector<8x16xf32> to vector<1x8x16xf32>
    %248 = vector.shape_cast %240 : vector<8x16xf32> to vector<1x8x16xf32>
    %249 = vector.shape_cast %241 : vector<8x16xf32> to vector<1x8x16xf32>
    %250 = vector.shape_cast %242 : vector<8x16xf32> to vector<1x8x16xf32>
    %251 = vector.shape_cast %243 : vector<8x16xf32> to vector<1x8x16xf32>
    %252 = vector.shape_cast %244 : vector<8x16xf32> to vector<1x8x16xf32>
    %253 = vector.shape_cast %245 : vector<8x16xf32> to vector<1x8x16xf32>
    %254 = vector.shape_cast %246 : vector<8x16xf32> to vector<1x8x16xf32>
    %255 = tpu.concatenate %247, %248, %249, %250, %251, %252, %253, %254 in 0 : vector<1x8x16xf32>, vector<1x8x16xf32>, vector<1x8x16xf32>, vector<1x8x16xf32>, vector<1x8x16xf32>, vector<1x8x16xf32>, vector<1x8x16xf32>, vector<1x8x16xf32> -> vector<8x8x16xf32>
    %256 = vector.extract_strided_slice %221 {offsets = [0, 128], sizes = [8, 16], strides = [1, 1]} : vector<16x192xf32> to vector<8x16xf32>
    %257 = vector.extract_strided_slice %221 {offsets = [0, 144], sizes = [8, 16], strides = [1, 1]} : vector<16x192xf32> to vector<8x16xf32>
    %258 = vector.extract_strided_slice %221 {offsets = [0, 160], sizes = [8, 16], strides = [1, 1]} : vector<16x192xf32> to vector<8x16xf32>
    %259 = vector.extract_strided_slice %221 {offsets = [0, 176], sizes = [8, 16], strides = [1, 1]} : vector<16x192xf32> to vector<8x16xf32>
    %260 = vector.extract_strided_slice %221 {offsets = [8, 128], sizes = [8, 16], strides = [1, 1]} : vector<16x192xf32> to vector<8x16xf32>
    %261 = vector.extract_strided_slice %221 {offsets = [8, 144], sizes = [8, 16], strides = [1, 1]} : vector<16x192xf32> to vector<8x16xf32>
    %262 = vector.extract_strided_slice %221 {offsets = [8, 160], sizes = [8, 16], strides = [1, 1]} : vector<16x192xf32> to vector<8x16xf32>
    %263 = vector.extract_strided_slice %221 {offsets = [8, 176], sizes = [8, 16], strides = [1, 1]} : vector<16x192xf32> to vector<8x16xf32>
    %264 = vector.shape_cast %256 : vector<8x16xf32> to vector<1x8x16xf32>
    %265 = vector.shape_cast %257 : vector<8x16xf32> to vector<1x8x16xf32>
    %266 = vector.shape_cast %258 : vector<8x16xf32> to vector<1x8x16xf32>
    %267 = vector.shape_cast %259 : vector<8x16xf32> to vector<1x8x16xf32>
    %268 = vector.shape_cast %260 : vector<8x16xf32> to vector<1x8x16xf32>
    %269 = vector.shape_cast %261 : vector<8x16xf32> to vector<1x8x16xf32>
    %270 = vector.shape_cast %262 : vector<8x16xf32> to vector<1x8x16xf32>
    %271 = vector.shape_cast %263 : vector<8x16xf32> to vector<1x8x16xf32>
    %272 = tpu.concatenate %264, %265, %266, %267, %268, %269, %270, %271 in 0 : vector<1x8x16xf32>, vector<1x8x16xf32>, vector<1x8x16xf32>, vector<1x8x16xf32>, vector<1x8x16xf32>, vector<1x8x16xf32>, vector<1x8x16xf32>, vector<1x8x16xf32> -> vector<8x8x16xf32>
    %273 = arith.truncf %238 : vector<8x8x16xf32> to vector<8x8x16xbf16>
    %274 = arith.truncf %255 : vector<8x8x16xf32> to vector<8x8x16xbf16>
    "tpu.trace_start"() <{level = 10 : i32, message = "zqd,zkd->zqk"}> : () -> ()
    %cst_75 = arith.constant dense<0.000000e+00> : vector<8x8x8xf32>
    %275 = tpu.matmul %273, %274, %cst_75 {dimension_numbers = #tpu.dot_dimension_numbers<[2], [2], [1], [1], [0, 0, 0, 1, 1, 1], [0], [0]>} : vector<8x8x16xbf16>, vector<8x8x16xbf16>, vector<8x8x8xf32> -> vector<8x8x8xf32>
    "tpu.trace_stop"() : () -> ()
    %cst_76 = arith.constant 2.500000e-01 : f32
    %276 = vector.broadcast %cst_76 : f32 to vector<8x8x8xf32>
    %277 = arith.mulf %275, %276 : vector<8x8x8xf32>
    %278 = arith.addf %277, %28 : vector<8x8x8xf32>
    %cst_77 = arith.constant dense<0xFF800000> : vector<8x8xf32>
    %279 = vector.multi_reduction <maximumf>, %278, %cst_77 [2] : vector<8x8x8xf32> to vector<8x8xf32>
    %280 = vector.shape_cast %279 : vector<8x8xf32> to vector<8x8x1xf32>
    %281 = vector.broadcast %280 : vector<8x8x1xf32> to vector<8x8x8xf32>
    %282 = arith.subf %278, %281 : vector<8x8x8xf32>
    %283 = math.exp %282 : vector<8x8x8xf32>
    %cst_78 = arith.constant dense<0.000000e+00> : vector<8x8xf32>
    %284 = vector.multi_reduction <add>, %283, %cst_78 [2] : vector<8x8x8xf32> to vector<8x8xf32>
    %285 = vector.shape_cast %284 : vector<8x8xf32> to vector<8x8x1xf32>
    %286 = arith.truncf %283 : vector<8x8x8xf32> to vector<8x8x8xbf16>
    %287 = arith.truncf %272 : vector<8x8x16xf32> to vector<8x8x16xbf16>
    "tpu.trace_start"() <{level = 10 : i32, message = "zqk,zkd->zqd"}> : () -> ()
    %cst_79 = arith.constant dense<0.000000e+00> : vector<8x8x16xf32>
    %288 = tpu.matmul %286, %287, %cst_79 {dimension_numbers = #tpu.dot_dimension_numbers<[2], [1], [1], [2], [0, 0, 0, 1, 1, 2], [0], [0]>} : vector<8x8x8xbf16>, vector<8x8x16xbf16>, vector<8x8x16xf32> -> vector<8x8x16xf32>
    "tpu.trace_stop"() : () -> ()
    %289 = tpu.reciprocal %285 {approx = true} : vector<8x8x1xf32> -> vector<8x8x1xf32>
    %290 = vector.broadcast %289 : vector<8x8x1xf32> to vector<8x8x16xf32>
    %291 = arith.mulf %288, %290 : vector<8x8x16xf32>
    %292 = vector.extract_strided_slice %291 {offsets = [0, 0, 0], sizes = [1, 8, 16], strides = [1, 1, 1]} : vector<8x8x16xf32> to vector<1x8x16xf32>
    %293 = vector.shape_cast %292 : vector<1x8x16xf32> to vector<8x16xf32>
    %294 = vector.extract_strided_slice %291 {offsets = [1, 0, 0], sizes = [1, 8, 16], strides = [1, 1, 1]} : vector<8x8x16xf32> to vector<1x8x16xf32>
    %295 = vector.shape_cast %294 : vector<1x8x16xf32> to vector<8x16xf32>
    %296 = vector.extract_strided_slice %291 {offsets = [2, 0, 0], sizes = [1, 8, 16], strides = [1, 1, 1]} : vector<8x8x16xf32> to vector<1x8x16xf32>
    %297 = vector.shape_cast %296 : vector<1x8x16xf32> to vector<8x16xf32>
    %298 = vector.extract_strided_slice %291 {offsets = [3, 0, 0], sizes = [1, 8, 16], strides = [1, 1, 1]} : vector<8x8x16xf32> to vector<1x8x16xf32>
    %299 = vector.shape_cast %298 : vector<1x8x16xf32> to vector<8x16xf32>
    %300 = tpu.concatenate %293, %295, %297, %299 in 1 : vector<8x16xf32>, vector<8x16xf32>, vector<8x16xf32>, vector<8x16xf32> -> vector<8x64xf32>
    %301 = vector.extract_strided_slice %291 {offsets = [4, 0, 0], sizes = [1, 8, 16], strides = [1, 1, 1]} : vector<8x8x16xf32> to vector<1x8x16xf32>
    %302 = vector.shape_cast %301 : vector<1x8x16xf32> to vector<8x16xf32>
    %303 = vector.extract_strided_slice %291 {offsets = [5, 0, 0], sizes = [1, 8, 16], strides = [1, 1, 1]} : vector<8x8x16xf32> to vector<1x8x16xf32>
    %304 = vector.shape_cast %303 : vector<1x8x16xf32> to vector<8x16xf32>
    %305 = vector.extract_strided_slice %291 {offsets = [6, 0, 0], sizes = [1, 8, 16], strides = [1, 1, 1]} : vector<8x8x16xf32> to vector<1x8x16xf32>
    %306 = vector.shape_cast %305 : vector<1x8x16xf32> to vector<8x16xf32>
    %307 = vector.extract_strided_slice %291 {offsets = [7, 0, 0], sizes = [1, 8, 16], strides = [1, 1, 1]} : vector<8x8x16xf32> to vector<1x8x16xf32>
    %308 = vector.shape_cast %307 : vector<1x8x16xf32> to vector<8x16xf32>
    %309 = tpu.concatenate %302, %304, %306, %308 in 1 : vector<8x16xf32>, vector<8x16xf32>, vector<8x16xf32>, vector<8x16xf32> -> vector<8x64xf32>
    %310 = tpu.concatenate %300, %309 in 0 : vector<8x64xf32>, vector<8x64xf32> -> vector<16x64xf32>
    %c1_80 = arith.constant 1 : index
    %c0_81 = arith.constant 0 : index
    %c0_82 = arith.constant 0 : index
    %311 = vector.load %arg5[%c1_80, %c0_81, %c0_82] : memref<2x64x64xbf16, #tpu.memory_space<vmem>>, vector<1x64x64xbf16>
    %312 = vector.shape_cast %311 : vector<1x64x64xbf16> to vector<64x64xbf16>
    %313 = arith.truncf %310 : vector<16x64xf32> to vector<16x64xbf16>
    %cst_83 = arith.constant dense<0.000000e+00> : vector<16x64xf32>
    %314 = tpu.matmul %313, %312, %cst_83 {dimension_numbers = #tpu.dot_dimension_numbers<[1], [0], [0], [1], [0, 0, 1, 1], [], []>} : vector<16x64xbf16>, vector<64x64xbf16>, vector<16x64xf32> -> vector<16x64xf32>
    %c1_84 = arith.constant 1 : index
    %c0_85 = arith.constant 0 : index
    %c0_86 = arith.constant 0 : index
    %315 = vector.load %arg6[%c1_84, %c0_85, %c0_86] : memref<2x1x64xf32, #tpu.memory_space<vmem>>, vector<1x1x64xf32>
    %316 = vector.shape_cast %315 : vector<1x1x64xf32> to vector<1x64xf32>
    %317 = vector.broadcast %316 : vector<1x64xf32> to vector<16x64xf32>
    %318 = arith.addf %314, %317 : vector<16x64xf32>
    %319 = arith.addf %213, %318 : vector<16x64xf32>
    %c1_87 = arith.constant 1 : index
    %c0_88 = arith.constant 0 : index
    %c0_89 = arith.constant 0 : index
    %320 = vector.load %arg7[%c1_87, %c0_88, %c0_89] : memref<2x1x64xf32, #tpu.memory_space<vmem>>, vector<1x1x64xf32>
    %321 = vector.shape_cast %320 : vector<1x1x64xf32> to vector<1x64xf32>
    %c1_90 = arith.constant 1 : index
    %c0_91 = arith.constant 0 : index
    %c0_92 = arith.constant 0 : index
    %322 = vector.load %arg8[%c1_90, %c0_91, %c0_92] : memref<2x1x64xf32, #tpu.memory_space<vmem>>, vector<1x1x64xf32>
    %323 = vector.shape_cast %322 : vector<1x1x64xf32> to vector<1x64xf32>
    %cst_93 = arith.constant dense<0.000000e+00> : vector<16xf32>
    %324 = vector.multi_reduction <add>, %319, %cst_93 [1] : vector<16x64xf32> to vector<16xf32>
    %325 = vector.shape_cast %324 : vector<16xf32> to vector<16x1xf32>
    %cst_94 = arith.constant 6.400000e+01 : f32
    %326 = vector.broadcast %cst_94 : f32 to vector<16x1xf32>
    %327 = arith.divf %325, %326 : vector<16x1xf32>
    %328 = vector.broadcast %327 : vector<16x1xf32> to vector<16x64xf32>
    %329 = arith.subf %319, %328 : vector<16x64xf32>
    %330 = arith.mulf %329, %329 : vector<16x64xf32>
    %cst_95 = arith.constant dense<0.000000e+00> : vector<16xf32>
    %331 = vector.multi_reduction <add>, %330, %cst_95 [1] : vector<16x64xf32> to vector<16xf32>
    %332 = vector.shape_cast %331 : vector<16xf32> to vector<16x1xf32>
    %cst_96 = arith.constant 6.400000e+01 : f32
    %333 = vector.broadcast %cst_96 : f32 to vector<16x1xf32>
    %334 = arith.divf %332, %333 : vector<16x1xf32>
    %cst_97 = arith.constant 9.99999974E-6 : f32
    %335 = vector.broadcast %cst_97 : f32 to vector<16x1xf32>
    %336 = arith.addf %334, %335 : vector<16x1xf32>
    %337 = math.rsqrt %336 : vector<16x1xf32>
    %338 = vector.broadcast %337 : vector<16x1xf32> to vector<16x64xf32>
    %339 = arith.mulf %329, %338 : vector<16x64xf32>
    %340 = vector.broadcast %321 : vector<1x64xf32> to vector<16x64xf32>
    %341 = arith.mulf %339, %340 : vector<16x64xf32>
    %342 = vector.broadcast %323 : vector<1x64xf32> to vector<16x64xf32>
    %343 = arith.addf %341, %342 : vector<16x64xf32>
    %c1_98 = arith.constant 1 : index
    %c0_99 = arith.constant 0 : index
    %c0_100 = arith.constant 0 : index
    %344 = vector.load %arg9[%c1_98, %c0_99, %c0_100] : memref<2x64x128xbf16, #tpu.memory_space<vmem>>, vector<1x64x128xbf16>
    %345 = vector.shape_cast %344 : vector<1x64x128xbf16> to vector<64x128xbf16>
    %346 = arith.truncf %343 : vector<16x64xf32> to vector<16x64xbf16>
    %cst_101 = arith.constant dense<0.000000e+00> : vector<16x128xf32>
    %347 = tpu.matmul %346, %345, %cst_101 {dimension_numbers = #tpu.dot_dimension_numbers<[1], [0], [0], [1], [0, 0, 1, 1], [], []>} : vector<16x64xbf16>, vector<64x128xbf16>, vector<16x128xf32> -> vector<16x128xf32>
    %c1_102 = arith.constant 1 : index
    %c0_103 = arith.constant 0 : index
    %c0_104 = arith.constant 0 : index
    %348 = vector.load %arg10[%c1_102, %c0_103, %c0_104] : memref<2x1x128xf32, #tpu.memory_space<vmem>>, vector<1x1x128xf32>
    %349 = vector.shape_cast %348 : vector<1x1x128xf32> to vector<1x128xf32>
    %350 = vector.broadcast %349 : vector<1x128xf32> to vector<16x128xf32>
    %351 = arith.addf %347, %350 : vector<16x128xf32>
    %352 = arith.mulf %351, %351 : vector<16x128xf32>
    %353 = arith.mulf %351, %352 : vector<16x128xf32>
    %cst_105 = arith.constant 4.471500e-02 : f32
    %354 = vector.broadcast %cst_105 : f32 to vector<16x128xf32>
    %355 = arith.mulf %354, %353 : vector<16x128xf32>
    %356 = arith.addf %351, %355 : vector<16x128xf32>
    %cst_106 = arith.constant 0.797884583 : f32
    %357 = vector.broadcast %cst_106 : f32 to vector<16x128xf32>
    %358 = arith.mulf %357, %356 : vector<16x128xf32>
    %359 = math.tanh %358 : vector<16x128xf32>
    %cst_107 = arith.constant 1.000000e+00 : f32
    %360 = vector.broadcast %cst_107 : f32 to vector<16x128xf32>
    %361 = arith.addf %360, %359 : vector<16x128xf32>
    %cst_108 = arith.constant 5.000000e-01 : f32
    %362 = vector.broadcast %cst_108 : f32 to vector<16x128xf32>
    %363 = arith.mulf %362, %361 : vector<16x128xf32>
    %364 = arith.mulf %351, %363 : vector<16x128xf32>
    %c1_109 = arith.constant 1 : index
    %c0_110 = arith.constant 0 : index
    %c0_111 = arith.constant 0 : index
    %365 = vector.load %arg11[%c1_109, %c0_110, %c0_111] : memref<2x128x64xbf16, #tpu.memory_space<vmem>>, vector<1x128x64xbf16>
    %366 = vector.shape_cast %365 : vector<1x128x64xbf16> to vector<128x64xbf16>
    %367 = arith.truncf %364 : vector<16x128xf32> to vector<16x128xbf16>
    %cst_112 = arith.constant dense<0.000000e+00> : vector<16x64xf32>
    %368 = tpu.matmul %367, %366, %cst_112 {dimension_numbers = #tpu.dot_dimension_numbers<[1], [0], [0], [1], [0, 0, 1, 1], [], []>} : vector<16x128xbf16>, vector<128x64xbf16>, vector<16x64xf32> -> vector<16x64xf32>
    %c1_113 = arith.constant 1 : index
    %c0_114 = arith.constant 0 : index
    %c0_115 = arith.constant 0 : index
    %369 = vector.load %arg12[%c1_113, %c0_114, %c0_115] : memref<2x1x64xf32, #tpu.memory_space<vmem>>, vector<1x1x64xf32>
    %370 = vector.shape_cast %369 : vector<1x1x64xf32> to vector<1x64xf32>
    %371 = vector.broadcast %370 : vector<1x64xf32> to vector<16x64xf32>
    %372 = arith.addf %368, %371 : vector<16x64xf32>
    %373 = arith.addf %343, %372 : vector<16x64xf32>
    %c1_116 = arith.constant 1 : index
    %c0_117 = arith.constant 0 : index
    %c0_118 = arith.constant 0 : index
    %374 = vector.load %arg13[%c1_116, %c0_117, %c0_118] : memref<2x1x64xf32, #tpu.memory_space<vmem>>, vector<1x1x64xf32>
    %375 = vector.shape_cast %374 : vector<1x1x64xf32> to vector<1x64xf32>
    %c1_119 = arith.constant 1 : index
    %c0_120 = arith.constant 0 : index
    %c0_121 = arith.constant 0 : index
    %376 = vector.load %arg14[%c1_119, %c0_120, %c0_121] : memref<2x1x64xf32, #tpu.memory_space<vmem>>, vector<1x1x64xf32>
    %377 = vector.shape_cast %376 : vector<1x1x64xf32> to vector<1x64xf32>
    %cst_122 = arith.constant dense<0.000000e+00> : vector<16xf32>
    %378 = vector.multi_reduction <add>, %373, %cst_122 [1] : vector<16x64xf32> to vector<16xf32>
    %379 = vector.shape_cast %378 : vector<16xf32> to vector<16x1xf32>
    %cst_123 = arith.constant 6.400000e+01 : f32
    %380 = vector.broadcast %cst_123 : f32 to vector<16x1xf32>
    %381 = arith.divf %379, %380 : vector<16x1xf32>
    %382 = vector.broadcast %381 : vector<16x1xf32> to vector<16x64xf32>
    %383 = arith.subf %373, %382 : vector<16x64xf32>
    %384 = arith.mulf %383, %383 : vector<16x64xf32>
    %cst_124 = arith.constant dense<0.000000e+00> : vector<16xf32>
    %385 = vector.multi_reduction <add>, %384, %cst_124 [1] : vector<16x64xf32> to vector<16xf32>
    %386 = vector.shape_cast %385 : vector<16xf32> to vector<16x1xf32>
    %cst_125 = arith.constant 6.400000e+01 : f32
    %387 = vector.broadcast %cst_125 : f32 to vector<16x1xf32>
    %388 = arith.divf %386, %387 : vector<16x1xf32>
    %cst_126 = arith.constant 9.99999974E-6 : f32
    %389 = vector.broadcast %cst_126 : f32 to vector<16x1xf32>
    %390 = arith.addf %388, %389 : vector<16x1xf32>
    %391 = math.rsqrt %390 : vector<16x1xf32>
    %392 = vector.broadcast %391 : vector<16x1xf32> to vector<16x64xf32>
    %393 = arith.mulf %383, %392 : vector<16x64xf32>
    %394 = vector.broadcast %375 : vector<1x64xf32> to vector<16x64xf32>
    %395 = arith.mulf %393, %394 : vector<16x64xf32>
    %396 = vector.broadcast %377 : vector<1x64xf32> to vector<16x64xf32>
    %397 = arith.addf %395, %396 : vector<16x64xf32>
    %c0_127 = arith.constant 0 : index
    %c0_128 = arith.constant 0 : index
    %398 = vector.load %arg20[%c0_127, %c0_128] : memref<16x64xf32, #tpu.memory_space<vmem>>, vector<16x64xf32>
    tpu.vector_store %arg20[%c0_127, %c0_128], %397 {strides = array<i32>} : memref<16x64xf32, #tpu.memory_space<vmem>>, vector<16x64xf32>,
    %c0_129 = arith.constant 0 : index
    %399 = memref.load %arg0[%c0_129] : memref<2xi32, #tpu.memory_space<smem>>
    %c0_i32 = arith.constant 0 : i32
    %400 = arith.addi %c0_i32, %399 : i32
    %c1_i32_130 = arith.constant 1 : i32
    %401 = arith.subi %400, %c1_i32_130 : i32
    %402 = arith.index_cast %401 : i32 to index
    %c0_131 = arith.constant 0 : index
    %403 = vector.load %arg20[%402, %c0_131] : memref<16x64xf32, #tpu.memory_space<vmem>>, vector<1x64xf32>
    %c1_132 = arith.constant 1 : index
    %404 = memref.load %arg0[%c1_132] : memref<2xi32, #tpu.memory_space<smem>>
    %c8_i32 = arith.constant 8 : i32
    %405 = arith.addi %c8_i32, %404 : i32
    %c1_i32_133 = arith.constant 1 : i32
    %406 = arith.subi %405, %c1_i32_133 : i32
    %407 = arith.index_cast %406 : i32 to index
    %c0_134 = arith.constant 0 : index
    %408 = vector.load %arg20[%407, %c0_134] : memref<16x64xf32, #tpu.memory_space<vmem>>, vector<1x64xf32>
    %409 = tpu.concatenate %403, %408 in 0 : vector<1x64xf32>, vector<1x64xf32> -> vector<2x64xf32>
    %c0_135 = arith.constant 0 : index
    %c0_136 = arith.constant 0 : index
    %410 = vector.load %arg15[%c0_135, %c0_136] : memref<64x24xbf16, #tpu.memory_space<vmem>>, vector<64x24xbf16>
    %411 = arith.truncf %409 : vector<2x64xf32> to vector<2x64xbf16>
    %cst_137 = arith.constant dense<0.000000e+00> : vector<2x24xf32>
    %412 = tpu.matmul %411, %410, %cst_137 {dimension_numbers = #tpu.dot_dimension_numbers<[1], [0], [0], [1], [0, 0, 1, 1], [], []>} : vector<2x64xbf16>, vector<64x24xbf16>, vector<2x24xf32> -> vector<2x24xf32>
    %c0_138 = arith.constant 0 : index
    %c0_139 = arith.constant 0 : index
    %413 = vector.load %arg16[%c0_138, %c0_139] : memref<1x24xf32, #tpu.memory_space<vmem>>, vector<1x24xf32>
    %414 = vector.broadcast %413 : vector<1x24xf32> to vector<2x24xf32>
    %415 = arith.addf %412, %414 : vector<2x24xf32>
    %416 = math.tanh %415 : vector<2x24xf32>
    %c0_140 = arith.constant 0 : index
    %c0_141 = arith.constant 0 : index
    %417 = vector.load %arg17[%c0_140, %c0_141] : memref<24x128xbf16, #tpu.memory_space<vmem>>, vector<24x128xbf16>
    %418 = arith.truncf %416 : vector<2x24xf32> to vector<2x24xbf16>
    %cst_142 = arith.constant dense<0.000000e+00> : vector<2x128xf32>
    %419 = tpu.matmul %418, %417, %cst_142 {dimension_numbers = #tpu.dot_dimension_numbers<[1], [0], [0], [1], [0, 0, 1, 1], [], []>} : vector<2x24xbf16>, vector<24x128xbf16>, vector<2x128xf32> -> vector<2x128xf32>
    %c0_143 = arith.constant 0 : index
    %c0_144 = arith.constant 0 : index
    %420 = vector.load %arg18[%c0_143, %c0_144] : memref<1x128xf32, #tpu.memory_space<vmem>>, vector<1x128xf32>
    %421 = vector.broadcast %420 : vector<1x128xf32> to vector<2x128xf32>
    %422 = arith.addf %419, %421 : vector<2x128xf32>
    %c0_145 = arith.constant 0 : index
    %c0_146 = arith.constant 0 : index
    %423 = vector.load %arg19[%c0_145, %c0_146] : memref<2x128xf32, #tpu.memory_space<vmem>>, vector<2x128xf32>
    tpu.vector_store %arg19[%c0_145, %c0_146], %422 {strides = array<i32>} : memref<2x128xf32, #tpu.memory_space<vmem>>, vector<2x128xf32>,
    return
  }
}

</mosaic_0001>

<bundles_post_ra>
// kernel: mygpt_sequence_classifier_forward.1
= control target key start
LH: loop header
LB: loop body
LE: loop exit
PB: predicated region body
PF: predicated region fallthrough
CT: control target
= control target key end

     0   :  { %s4914_s0 = inlined_call_operand.vmem [shape: s32[2], index: 0, kind: input, shape index: {}]   ;;  %s4915_s1 = inlined_call_operand.vmem [shape: f32[16,64], index: 1, kind: input, shape index: {}]   ;;  %s4916_s2 = inlined_call_operand.vmem [shape: f32[4,8,8], index: 2, kind: input, shape index: {}]   ;;  %s4917_s3 = inlined_call_operand.vmem [shape: bf16[2,64,192], index: 3, kind: input, shape index: {}]   ;;  %s4918_s4 = inlined_call_operand.vmem [shape: f32[2,1,192], index: 4, kind: input, shape index: {}]   ;;  %s4919_s5 = inlined_call_operand.vmem [shape: bf16[2,64,64], index: 5, kind: input, shape index: {}]   ;;  %s4920_s6 = inlined_call_operand.vmem [shape: f32[2,1,64], index: 6, kind: input, shape index: {}]   ;;  %s4921_s7 = inlined_call_operand.vmem [shape: f32[2,1,64], index: 7, kind: input, shape index: {}]   ;;  %s4922_s8 = inlined_call_operand.vmem [shape: f32[2,1,64], index: 8, kind: input, shape index: {}]   ;;  %s4923_s9 = inlined_call_operand.vmem [shape: bf16[2,64,128], index: 9, kind: input, shape index: {}]   ;;  %s4924_s10 = inlined_call_operand.vmem [shape: f32[2,1,128], index: 10, kind: input, shape index: {}]   ;;  %s4925_s11 = inlined_call_operand.vmem [shape: bf16[2,128,64], index: 11, kind: input, shape index: {}]   ;;  %s4926_s12 = inlined_call_operand.vmem [shape: f32[2,1,64], index: 12, kind: input, shape index: {}]   ;;  %s4927_s13 = inlined_call_operand.vmem [shape: f32[2,1,64], index: 13, kind: input, shape index: {}]   ;;  %s4928_s14 = inlined_call_operand.vmem [shape: f32[2,1,64], index: 14, kind: input, shape index: {}]   ;;  %s4929_s15 = inlined_call_operand.vmem [shape: bf16[64,24], index: 15, kind: input, shape index: {}]   ;;  %s4930_s16 = inlined_call_operand.vmem [shape: f32[1,24], index: 16, kind: input, shape index: {}]   ;;  %s4931_s17 = inlined_call_operand.vmem [shape: bf16[24,128], index: 17, kind: input, shape index: {}]   ;;  %s4932_s18 = inlined_call_operand.vmem [shape: f32[1,128], index: 18, kind: input, shape index: {}]   ;;  %s4933_s19 = inlined_call_operand.hbm [shape: f32[2,128], index: 19, kind: output, shape index: {}]  }
   0x1   :  { %4940 = sst [smem:[#allocation9_spill]] %s4914_s0 }
   0x2   :  { %4941 = sst [smem:[#allocation10_spill]] %s4915_s1 }
   0x3   :  { %4942 = sst [smem:[#allocation11_spill]] %s4916_s2 }
   0x4   :  { %4943 = sst [smem:[#allocation12_spill]] %s4917_s3 }
   0x5   :  { %24 = vsyncpa [#allocation5], 0 }
   0x6   :  { %25 = vsyncpa [#allocation4], 0  ;;  %s4944_s20 = sld [smem:[#allocation9_spill]] }
   0xc   :  { %s32_s21 = sshll.u32 %s4944_s20, 4  ;;  %s33_s21 = int_to_ptr.vmem [resolvable:$true] %s32_s21 }
   0xd   :  { %s3999_s1 = scalar_lea.vmem %s33_s21, 16  ;;  %p4004_p1 = scmp.lt.s32.totalorder %s33_s21, %s33_s21 }
   0xe   :  { %p4000_p0 = scmp.ne.s32.totalorder %s33_s21, %s3999_s1  ;;  %p4005_p2 = scmp.lt.s32.totalorder %s3999_s1, %s3999_s1 }
  0x10   :  { %p4006_p3 = por %p4005_p2, %p4004_p1 }
  0x12   :  { %p4007_p4 = pnand %p4006_p3, %p4000_p0 }
  0x14   :  { %4010 = shalt.err (!%p4007_p4)
}
  0x15   :  { %s4037_s22 = smov [#allocation3]  }
  0x16   :  { %35 = dma.vmem_to_smem %s33_s21, 16, %s4037_s22, [#allocation5]  }
  0x17   :  { %4033 = dma.done.wait [#allocation5], 16  }
  0x18   :  { %4034 = vsyncadd [#allocation5], 4294967280 }
  0x19   :  { %75 = sfence }
  0x1a   :  { %s4945_s24 = sld [smem:[#allocation12_spill]]  ;;  %v4038_v2 = vmov 0   ;;  %vm170_vm0 = vcmask 523264   ;;  %s4946_s26 = sld [smem:[#allocation10_spill]]  ;;  %v77_v12 = vlaneseq  ;;  %v118_v15 = vld [vmem:[%s4918_s4] sm:$0x3] }
  0x1b   :  { %206 = vmatprep.mubr.bf16.mxu0 %v4038_v2  ;;  %v4039_v23 = vmov 0.0   ;;  %s4040_s30 = smov 80   ;;  %s4041_s20 = smov 112   ;;  %vm4043_vm1 = vmmov 0   ;;  %vm268_vm2 = vcmask 130048   ;;  %vm766_vm3 = vcmask 1043456  }
  0x1c   :  { %v4185_v13 = vshrl.u32 %v77_v12, 7  ;;  %3503 = vmatprep.subr.bf16.mxu1 %v4039_v23  ;;  %s4042_s21 = smov 96   ;;  %3505 = vmatprep.mubr.msk.bf16.mxu1 %vm4043_vm1, %v4039_v23  ;;  %s4044_s1 = smov 64   ;;  %v4269_v63 = vand.u32 127, %v77_v12  ;;  %vm674_vm7 = vcmask 64512   ;;  %vm1161_vm11 = vcmask 261120  }
  0x1d   :  { %s83_s22 = sld [smem:[#allocation3]]  ;;  %s4947_s3 = sld [smem:[#allocation11_spill]]  ;;  %vm1163_vm12 = vcmask 392192   ;;  %vm3053_vm13 = vcmask 1040384   ;;  %vm3159_vm14 = vcmask 195584  }
  0x1e   :  { %v122_v14 = vsub.s32 0, %v4185_v13  ;;  %v126_v17 = vsub.s32 1, %v4185_v13  ;;  %s3226_s23 = sld [smem:[#allocation3 + $0x1]]  ;;  %s4937_s27 = smov 48  }
  0x20   :  { %v3845_v0 = vld [vmem:[%s4945_s24 + $0x4] ss:$8 sps:$4 sm:$0xff]   ;;  %v3847_v1 = vld [vmem:[%s4945_s24] ss:$8 sps:$4 sm:$0xff]   ;;  %v3848_v3 = vld [vmem:[%s4945_s24 + $0x14] ss:$8 sps:$4 sm:$0xff]   ;;  %v123_v16 = vrot.slane %v118_v15, %v122_v14  ;;  %v127_v21 = vrot.slane %v118_v15, %v126_v17 }
  0x21   :  { %174 = vmatprep.subr.bf16.mxu0 %v3845_v0  ;;  %v3850_v4 = vld [vmem:[%s4945_s24 + $0x10] ss:$8 sps:$4 sm:$0xff]   ;;  %v3851_v5 = vld [vmem:[%s4945_s24 + $0x24] ss:$8 sps:$4 sm:$0xff]   ;;  %v3853_v6 = vld [vmem:[%s4945_s24 + $0x20] ss:$8 sps:$4 sm:$0xff]  }
  0x22   :  { %175 = vmatpush1.bf16.msra.mxu0 %v3847_v1  ;;  %v3854_v7 = vld [vmem:[%s4945_s24 + $0x34] ss:$8 sps:$4 sm:$0xff]   ;;  %v3856_v8 = vld [vmem:[%s4945_s24 + $0x30] ss:$8 sps:$4 sm:$0xff]   ;;  %v107_v9 = vld [vmem:[%s4946_s26] sm:$0xff] }
  0x23   :  { %176 = vmatprep.subr.bf16.mxu0 %v3848_v3  ;;  %v108_v10 = vld [vmem:[%s4946_s26 + $0x8] sm:$0xff]  ;;  %s3225_s2 = sadd.s32 4294967295, %s83_s22  ;;  %v84_v0 = vstv %s83_s22  ;;  %v4276_v3 = vld [vmem:[%s4947_s3] sm:$0xff]  ;;  %s4949_s22 = smov 32  }
  0x24   :  { %v117_v11 = vpack.c.bf16 %v108_v10, %v107_v9  ;;  %v87_v1 = vstv %s3225_s2  ;;  %vm85_vm4 = vcmp.ge.s32.totalorder %v4269_v63, %v84_v0  ;;  %v4287_v15 = vld [vmem:[%s4947_s3 + $0x8] sm:$0xff]  ;;  %s3227_s25 = sadd.s32 4294967295, %s3226_s23  ;;  %v96_v0 = vstv %s3226_s23 }
  0x25   :  { %vm88_vm5 = vcmp.eq.s32.totalorder %v4269_v63, %v87_v1  ;;  %v99_v1 = vstv %s3227_s25  ;;  %vm97_vm8 = vcmp.ge.s32.totalorder %v4269_v63, %v96_v0  ;;  %s4939_s25 = smov 16  }
  0x26   :  { %177 = vmatpush1.bf16.msra.mxu0 %v3850_v4  ;;  %vm89_vm6 = vmor %vm85_vm4, %vm88_vm5  ;;  %vm100_vm9 = vcmp.eq.s32.totalorder %v4269_v63, %v99_v1 }
  0x27   :  { %178 = vmatprep.subr.bf16.mxu0 %v3851_v5  ;;  %v90_v4 = vsel %vm89_vm6, -1e+09, %v4039_v23  ;;  %vm101_vm10 = vmor %vm97_vm8, %vm100_vm9 }
  0x28   :  { %v4280_v5 = vadd.f32 %v90_v4, %v4276_v3 }
  0x2a   :  { %179 = vmatpush1.bf16.msra.mxu0 %v3853_v6 }
  0x2b   :  { %180 = vmatprep.subr.bf16.mxu0 %v3854_v7 }
  0x2e   :  { %181 = vmatpush1.bf16.msra.mxu0 %v3856_v8 }
  0x2f   :  { %3515 = vmatprep.subr.bf16.mxu0 %v4039_v23 }
  0x31   :  { %3236 = vmatmul.mubr.msk.bf16.vlgmr.msra.gmra.mrb[0].mxu0 %vm170_vm0, %v117_v11 }
  0x32   :  { %3517 = vmatprep.mubr.msk.bf16.mxu0 %vm4043_vm1, %v4039_v23 }
 0x104   :  { %v208_v18 = vpop.f32.mrb[0].mxu0 }
 0x105   :  { %v209_v19 = vadd.f32 %v208_v18, %v123_v16  ;;  %v210_v20 = vpop.f32.mrb[1].mxu0 }
 0x106   :  { %v212_v22 = vpop.f32.mrb[2].mxu0  ;;  %v4220_v43 = vadd.f32 %v210_v20, %v127_v21 }
 0x107   :  { %v214_v24 = vpop.f32.mrb[3].mxu0  ;;  %224 = vrot.lane.b32.xlu1 %v209_v19, %s4040_s30  ;;  %218 = vrot.lane.b32.xlu0 %v209_v19, %s4041_s20  ;;  %v213_v26 = vadd.f32 %v212_v22, %v123_v16  ;;  %v257_v27 = vpack.c.bf16 %v209_v19, %v209_v19  ;;  %v4290_v16 = vadd.f32 %v90_v4, %v4287_v15 }
 0x108   :  { %v4200_v25 = vadd.f32 %v214_v24, %v127_v21  ;;  %v755_v58 = vpack.c.bf16 %v4220_v43, %v4220_v43 }
 0x109   :  { %v261_v37 = vpack.c.bf16 %v213_v26, %v213_v26 }
 0x10a   :  { %v768_v61 = vsel %vm766_vm3, %v755_v58, 0 }
 0x10b   :  { %228 = vrot.lane.b32.xlu1 %v213_v26, %s4041_s20  ;;  %221 = vrot.lane.b32.xlu0 %v209_v19, %s4042_s21  ;;  %v81_v19 = vld [vmem:[%s4947_s3 + $0x10] sm:$0xff] }
 0x10f   :  { %234 = vrot.lane.b32.xlu1 %v213_v26, %s4040_s30  ;;  %231 = vrot.lane.b32.xlu0 %v213_v26, %s4042_s21 }
 0x113   :  { %266 = vrot.lane.b32.xlu0 %v257_v27, %s4044_s1 }
 0x179   :  { %v225_v28 = vpop.permute.xlu1 %224  ;;  %v219_v29 = vpop.permute.xlu0 %218 }
 0x17a   :  { %v258_v30 = vpack.c.bf16 %v219_v29, %v219_v29  ;;  %v260_v33 = vpack.c.bf16 %v225_v28, %v225_v28  ;;  %v82_v29 = vld [vmem:[%s4947_s3 + $0x18] sm:$0xff]  ;;  %s4938_s3 = smov 32  }
 0x17c   :  { %316 = vrot.lane.b32.xlu1 %v258_v30, %s4044_s1 }
 0x17d   :  { %v229_v31 = vpop.permute.xlu1 %228  ;;  %v222_v32 = vpop.permute.xlu0 %221 }
 0x17e   :  { %v259_v34 = vpack.c.bf16 %v222_v32, %v222_v32  ;;  %v262_v36 = vpack.c.bf16 %v229_v31, %v229_v31 }
 0x180   :  { %414 = vrot.lane.b32.xlu1 %v260_v33, %s4044_s1  ;;  %365 = vrot.lane.b32.xlu0 %v259_v34, %s4044_s1 }
 0x181   :  { %v232_v35 = vpop.permute.xlu0 %231  ;;  %v235_v38 = vpop.permute.xlu1 %234 }
 0x182   :  { %v264_v40 = vpack.c.bf16 %v235_v38, %v235_v38  ;;  %v263_v41 = vpack.c.bf16 %v232_v35, %v232_v35 }
 0x184   :  { %512 = vrot.lane.b32.xlu1 %v262_v36, %s4044_s1  ;;  %463 = vrot.lane.b32.xlu0 %v261_v37, %s4044_s1 }
 0x185   :  { %v267_v39 = vpop.permute.xlu0 %266 }
 0x186   :  { %v273_v42 = vsel %vm268_vm2, %v267_v39, 0 }
 0x187   :  { %3504 = vmatpush3.bf16.xpose.msra.mxu1 %v273_v42 }
 0x188   :  { %610 = vrot.lane.b32.xlu1 %v264_v40, %s4044_s1  ;;  %561 = vrot.lane.b32.xlu0 %v263_v41, %s4044_s1 }
 0x189   :  { %3509 = vmatprep.subr.bf16.mxu1 %v4039_v23 }
 0x18c   :  { %238 = vrot.lane.b32.xlu1 %v4220_v43, %s4041_s20 }
 0x18e   :  { %3506 = vmatmul.mubr.msk.bf16.vlgmr.msra.gmra.mrb[0].mxu1 %vm268_vm2, %v257_v27  ;;  %v4298_v27 = vadd.f32 %v90_v4, %v81_v19 }
 0x18f   :  { %3511 = vmatprep.mubr.msk.bf16.mxu1 %vm4043_vm1, %v4039_v23 }
 0x1ee   :  { %v317_v44 = vpop.permute.xlu1 %316 }
 0x1ef   :  { %v322_v45 = vsel %vm268_vm2, %v317_v44, 0 }
 0x1f0   :  { %3510 = vmatpush3.bf16.xpose.msra.mxu1 %v322_v45 }
 0x1f1   :  { %3521 = vmatprep.subr.bf16.mxu1 %v4039_v23 }
 0x1f2   :  { %v366_v46 = vpop.permute.xlu0 %365  ;;  %v415_v48 = vpop.permute.xlu1 %414 }
 0x1f3   :  { %v371_v47 = vsel %vm268_vm2, %v366_v46, 0  ;;  %v420_v49 = vsel %vm268_vm2, %v415_v48, 0 }
 0x1f4   :  { %3516 = vmatpush3.bf16.xpose.msra.mxu0 %v371_v47 }
 0x1f5   :  { %3527 = vmatprep.subr.bf16.mxu0 %v4039_v23 }
 0x1f6   :  { %v464_v50 = vpop.permute.xlu0 %463  ;;  %v513_v52 = vpop.permute.xlu1 %512 }
 0x1f7   :  { %3512 = vmatmul.mubr.msk.bf16.vlgmr.msra.gmra.mrb[4].mxu1 %vm268_vm2, %v258_v30  ;;  %v469_v51 = vsel %vm268_vm2, %v464_v50, 0  ;;  %v518_v53 = vsel %vm268_vm2, %v513_v52, 0 }
 0x1f8   :  { %3522 = vmatpush3.bf16.xpose.msra.mxu1 %v420_v49  ;;  %3523 = vmatprep.mubr.msk.bf16.mxu1 %vm4043_vm1, %v4039_v23 }
 0x1f9   :  { %3533 = vmatprep.subr.bf16.mxu1 %v4039_v23 }
 0x1fa   :  { %v562_v54 = vpop.permute.xlu0 %561  ;;  %v611_v55 = vpop.permute.xlu1 %610 }
 0x1fb   :  { %3518 = vmatmul.mubr.msk.bf16.vlgmr.msra.gmra.mrb[4].mxu0 %vm268_vm2, %v259_v34  ;;  %v567_v56 = vsel %vm268_vm2, %v562_v54, 0  ;;  %v616_v57 = vsel %vm268_vm2, %v611_v55, 0 }
 0x1fc   :  { %3528 = vmatpush3.bf16.xpose.msra.mxu0 %v469_v51  ;;  %3529 = vmatprep.mubr.msk.bf16.mxu0 %vm4043_vm1, %v4039_v23 }
 0x1fd   :  { %3539 = vmatprep.subr.bf16.mxu0 %v4039_v23 }
 0x1fe   :  { %v239_v59 = vpop.permute.xlu1 %238 }
 0x1ff   :  { %3524 = vmatmul.mubr.msk.bf16.vlgmr.msra.gmra.mrb[8].mxu1 %vm268_vm2, %v260_v33  ;;  %v756_v60 = vpack.c.bf16 %v239_v59, %v239_v59 }
 0x200   :  { %3534 = vmatpush3.bf16.xpose.msra.mxu1 %v518_v53  ;;  %3535 = vmatprep.mubr.msk.bf16.mxu1 %vm4043_vm1, %v4039_v23 }
 0x201   :  { %3545 = vmatprep.subr.bf16.mxu1 %v4039_v23  ;;  %v814_v62 = vsel %vm766_vm3, %v756_v60, 0 }
 0x203   :  { %3530 = vmatmul.mubr.msk.bf16.vlgmr.msra.gmra.mrb[8].mxu0 %vm268_vm2, %v261_v37 }
 0x204   :  { %3540 = vmatpush3.bf16.xpose.msra.mxu0 %v567_v56  ;;  %3541 = vmatprep.mubr.msk.bf16.mxu0 %vm4043_vm1, %v4039_v23 }
 0x205   :  { %3551 = vmatprep.subr.bf16.mxu0 %v4039_v23 }
 0x207   :  { %3536 = vmatmul.mubr.msk.bf16.vlgmr.msra.gmra.mrb[12].mxu1 %vm268_vm2, %v262_v36  ;;  %v4308_v36 = vadd.f32 %v90_v4, %v82_v29 }
 0x208   :  { %3546 = vmatpush3.bf16.xpose.msra.mxu1 %v616_v57  ;;  %3547 = vmatprep.mubr.msk.bf16.mxu1 %vm4043_vm1, %v4039_v23 }
 0x209   :  { %3557 = vmatprep.subr.bf16.mxu1 %v4039_v23 }
 0x20b   :  { %3542 = vmatmul.mubr.msk.bf16.vlgmr.msra.gmra.mrb[12].mxu0 %vm268_vm2, %v263_v41 }
 0x20c   :  { %3552 = vmatpush3.bf16.msra.mxu0 %v768_v61  ;;  %3553 = vmatprep.mubr.msk.bf16.mxu0 %vm4043_vm1, %v4039_v23 }
 0x20d   :  { %3563 = vmatprep.subr.bf16.mxu0 %v4039_v23 }
 0x20f   :  { %3548 = vmatmul.mubr.msk.bf16.vlgmr.msra.gmra.mrb[16].mxu1 %vm268_vm2, %v264_v40 }
 0x210   :  { %3558 = vmatpush3.bf16.msra.mxu1 %v814_v62  ;;  %3559 = vmatprep.mubr.msk.bf16.mxu1 %vm4043_vm1, %v4039_v23 }
 0x211   :  { %3569 = vmatprep.subr.bf16.mxu1 %v4039_v23 }
 0x261   :  { %v309_v6 = vpop.f32.mrb[0].mxu1 }
 0x262   :  { %v658_v7 = vmul.f32 0.25, %v309_v6  ;;  %v3507_v8 = vpop.f32.mrb[1].mxu1 }
 0x263   :  { %v312_v9 = vpop.f32.mrb[2].mxu1 }
 0x264   :  { %v3508_v10 = vpop.f32.mrb[3].mxu1  ;;  %v666_v11 = vadd.f32 %v658_v7, %v4280_v5  ;;  %v102_v7 = vsel %vm101_vm10, -1e+09, %v4039_v23 }
 0x265   :  { %v4327_v9 = vadd.f32 %v102_v7, %v4276_v3 }
 0x266   :  { %v675_v12 = vsel %vm674_vm7, %v666_v11, -inf }
 0x267   :  { %676 = vmax.xlane.f32.xlu0 %v675_v12  ;;  %v4334_v12 = vadd.f32 %v102_v7, %v4287_v15 }
 0x2ca   :  { %v358_v18 = vpop.f32.mrb[4].mxu1 }
 0x2cb   :  { %v659_v20 = vmul.f32 0.25, %v358_v18  ;;  %v3513_v21 = vpop.f32.mrb[5].mxu1 }
 0x2cc   :  { %v361_v22 = vpop.f32.mrb[6].mxu1  ;;  %v4342_v21 = vadd.f32 %v102_v7, %v82_v29 }
 0x2cd   :  { %v3514_v24 = vpop.f32.mrb[7].mxu1  ;;  %v4296_v26 = vadd.f32 %v659_v20, %v4290_v16 }
 0x2ce   :  { %v407_v28 = vpop.f32.mrb[4].mxu0 }
 0x2cf   :  { %v660_v30 = vmul.f32 0.25, %v407_v28  ;;  %v3519_v31 = vpop.f32.mrb[5].mxu0  ;;  %v678_v32 = vsel %vm674_vm7, %v4296_v26, -inf }
 0x2d0   :  { %v410_v33 = vpop.f32.mrb[6].mxu0  ;;  %679 = vmax.xlane.f32.xlu1 %v678_v32 }
 0x2d1   :  { %v3520_v34 = vpop.f32.mrb[7].mxu0  ;;  %v4306_v35 = vadd.f32 %v660_v30, %v4298_v27 }
 0x2d2   :  { %v456_v37 = vpop.f32.mrb[8].mxu1 }
 0x2d3   :  { %v661_v38 = vmul.f32 0.25, %v456_v37  ;;  %v3525_v39 = vpop.f32.mrb[9].mxu1  ;;  %v681_v40 = vsel %vm674_vm7, %v4306_v35, -inf }
 0x2d4   :  { %v459_v41 = vpop.f32.mrb[10].mxu1  ;;  %682 = vmax.xlane.f32.xlu0 %v681_v40 }
 0x2d5   :  { %v3526_v42 = vpop.f32.mrb[11].mxu1  ;;  %v4313_v44 = vadd.f32 %v661_v38, %v4308_v36 }
 0x2d6   :  { %v505_v45 = vpop.f32.mrb[8].mxu0 }
 0x2d7   :  { %v3531_v46 = vpop.f32.mrb[9].mxu0  ;;  %v684_v47 = vsel %vm674_vm7, %v4313_v44, -inf  ;;  %v662_v8 = vmul.f32 0.25, %v505_v45 }
 0x2d8   :  { %v508_v48 = vpop.f32.mrb[10].mxu0  ;;  %685 = vmax.xlane.f32.xlu0 %v684_v47 }
 0x2d9   :  { %v3532_v49 = vpop.f32.mrb[11].mxu0  ;;  %v4339_v20 = vadd.f32 %v662_v8, %v4327_v9 }
 0x2da   :  { %v554_v50 = vpop.f32.mrb[12].mxu1 }
 0x2db   :  { %v3537_v51 = vpop.f32.mrb[13].mxu1  ;;  %v687_v15 = vsel %vm674_vm7, %v4339_v20, -inf }
 0x2dc   :  { %v557_v52 = vpop.f32.mrb[14].mxu1 }
 0x2dd   :  { %v3538_v53 = vpop.f32.mrb[15].mxu1 }
 0x2de   :  { %v603_v54 = vpop.f32.mrb[12].mxu0 }
 0x2df   :  { %v3543_v55 = vpop.f32.mrb[13].mxu0  ;;  %v664_v18 = vmul.f32 0.25, %v603_v54 }
 0x2e0   :  { %v606_v56 = vpop.f32.mrb[14].mxu0 }
 0x2e1   :  { %v3544_v57 = vpop.f32.mrb[15].mxu0  ;;  %244 = vrot.lane.b32.xlu1 %v4220_v43, %s4040_s30 }
 0x2e2   :  { %v652_v58 = vpop.f32.mrb[16].mxu1 }
 0x2e3   :  { %v3549_v59 = vpop.f32.mrb[17].mxu1  ;;  %v665_v3 = vmul.f32 0.25, %v652_v58 }
 0x2e4   :  { %v655_v60 = vpop.f32.mrb[18].mxu1 }
 0x2e5   :  { %v3550_v61 = vpop.f32.mrb[19].mxu1  ;;  %248 = vrot.lane.b32.xlu1 %v4200_v25, %s4041_s20  ;;  %v4359_v29 = vadd.f32 %v665_v3, %v4342_v21 }
 0x2e7   :  { %v696_v30 = vsel %vm674_vm7, %v4359_v29, -inf }
 0x2ee   :  { %241 = vrot.lane.b32.xlu0 %v4220_v43, %s4042_s21  ;;  %v4331_v43 = vadd.f32 %v102_v7, %v81_v19 }
 0x2f0   :  { %v4349_v19 = vadd.f32 %v664_v18, %v4331_v43 }
 0x2f2   :  { %v693_v24 = vsel %vm674_vm7, %v4349_v19, -inf }
 0x2f4   :  { %v677_v62 = vpop.xlane.xlu0 %676 }
 0x2f5   :  { %v699_v4 = vsub.f32 %v666_v11, %v677_v62  ;;  %v663_v11 = vmul.f32 0.25, %v554_v50 }
 0x2f7   :  { %v707_v6 = vmul.f32 1.442695, %v699_v4  ;;  %v4352_v22 = vadd.f32 %v663_v11, %v4334_v12 }
 0x2f9   :  { %3907 = vpow2.f32 %v707_v6  ;;  %v690_v28 = vsel %vm674_vm7, %v4352_v22, -inf }
 0x303   :  { %v4329_v10 = vpop.eup %3907 }
 0x304   :  { %v747_v63 = vpack.c.bf16 %v4329_v10, %v4329_v10 }
 0x306   :  { %3554 = vmatmul.mubr.msk.bf16.vlgmr.msra.gmra.mrb[16].mxu0 %vm674_vm7, %v747_v63 }
 0x307   :  { %3565 = vmatprep.mubr.msk.bf16.mxu0 %vm4043_vm1, %v4039_v23 }
 0x309   :  { %688 = vmax.xlane.f32.xlu1 %v687_v15 }
 0x30d   :  { %694 = vmax.xlane.f32.xlu1 %v693_v24  ;;  %691 = vmax.xlane.f32.xlu0 %v690_v28 }
 0x311   :  { %697 = vmax.xlane.f32.xlu0 %v696_v30 }
 0x31e   :  { %254 = vrot.lane.b32.xlu1 %v4200_v25, %s4040_s30 }
 0x327   :  { %251 = vrot.lane.b32.xlu0 %v4200_v25, %s4042_s21 }
 0x35d   :  { %v680_v31 = vpop.xlane.xlu1 %679 }
 0x35e   :  { %v700_v32 = vsub.f32 %v4296_v26, %v680_v31 }
 0x360   :  { %v709_v33 = vmul.f32 1.442695, %v700_v32 }
 0x361   :  { %v683_v34 = vpop.xlane.xlu0 %682  ;;  %v245_v41 = vpop.permute.xlu1 %244 }
 0x362   :  { %3909 = vpow2.f32 %v709_v33  ;;  %v701_v37 = vsub.f32 %v4306_v35, %v683_v34  ;;  %v758_v47 = vpack.c.bf16 %v245_v41, %v245_v41  ;;  %v723_v41 = vsel %vm674_vm7, %v4329_v10, 0.0 }
 0x364   :  { %v711_v38 = vmul.f32 1.442695, %v701_v37  ;;  %v906_v35 = vsel %vm766_vm3, %v758_v47, 0 }
 0x365   :  { %v686_v39 = vpop.xlane.xlu0 %685  ;;  %v249_v52 = vpop.permute.xlu1 %248 }
 0x366   :  { %3911 = vpow2.f32 %v711_v38  ;;  %v702_v40 = vsub.f32 %v4313_v44, %v686_v39  ;;  %v759_v44 = vpack.c.bf16 %v4200_v25, %v4200_v25  ;;  %v760_v55 = vpack.c.bf16 %v249_v52, %v249_v52 }
 0x368   :  { %v713_v42 = vmul.f32 1.442695, %v702_v40  ;;  %v952_v56 = vsel %vm766_vm3, %v759_v44, 0  ;;  %v998_v58 = vsel %vm766_vm3, %v760_v55, 0 }
 0x369   :  { %v242_v45 = vpop.permute.xlu0 %241 }
 0x36a   :  { %3913 = vpow2.f32 %v713_v42  ;;  %v757_v46 = vpack.c.bf16 %v242_v45, %v242_v45 }
 0x36c   :  { %v3910_v48 = vpop.eup %3909  ;;  %v860_v49 = vsel %vm766_vm3, %v757_v46, 0 }
 0x36d   :  { %3564 = vmatpush3.bf16.msra.mxu0 %v860_v49  ;;  %v726_v26 = vsel %vm674_vm7, %v3910_v48, 0.0  ;;  %v748_v50 = vpack.c.bf16 %v3910_v48, %v3910_v48  ;;  %v3857_v49 = vld [vmem:[%s4919_s5] sm:$0xff]  }
 0x36e   :  { %727 = vadd.xlane.f32.xlu0 %v726_v26  ;;  %3575 = vmatprep.subr.bf16.mxu0 %v4039_v23 }
 0x36f   :  { %3560 = vmatmul.mubr.msk.bf16.vlgmr.msra.gmra.mrb[20].mxu1 %vm674_vm7, %v748_v50 }
 0x370   :  { %v3912_v51 = vpop.eup %3911  ;;  %3570 = vmatpush3.bf16.msra.mxu1 %v906_v35  ;;  %3571 = vmatprep.mubr.msk.bf16.mxu1 %vm4043_vm1, %v4039_v23 }
 0x371   :  { %v729_v53 = vsel %vm674_vm7, %v3912_v51, 0.0  ;;  %v749_v54 = vpack.c.bf16 %v3912_v51, %v3912_v51  ;;  %3581 = vmatprep.subr.bf16.mxu1 %v4039_v23 }
 0x372   :  { %730 = vadd.xlane.f32.xlu0 %v729_v53 }
 0x373   :  { %3566 = vmatmul.mubr.msk.bf16.vlgmr.msra.gmra.mrb[20].mxu0 %vm674_vm7, %v749_v54 }
 0x374   :  { %v3914_v57 = vpop.eup %3913  ;;  %3576 = vmatpush3.bf16.msra.mxu0 %v952_v56  ;;  %3577 = vmatprep.mubr.msk.bf16.mxu0 %vm4043_vm1, %v4039_v23 }
 0x375   :  { %v750_v25 = vpack.c.bf16 %v3914_v57, %v3914_v57  ;;  %3587 = vmatprep.subr.bf16.mxu0 %v4039_v23  ;;  %v732_v39 = vsel %vm674_vm7, %v3914_v57, 0.0 }
 0x377   :  { %3572 = vmatmul.mubr.msk.bf16.vlgmr.msra.gmra.mrb[24].mxu1 %vm674_vm7, %v750_v25 }
 0x378   :  { %3582 = vmatpush3.bf16.msra.mxu1 %v998_v58  ;;  %3583 = vmatprep.mubr.msk.bf16.mxu1 %vm4043_vm1, %v4039_v23 }
 0x379   :  { %3593 = vmatprep.subr.bf16.mxu1 %v4039_v23 }
 0x396   :  { %v689_v59 = vpop.xlane.xlu1 %688 }
 0x397   :  { %v703_v60 = vsub.f32 %v4339_v20, %v689_v59 }
 0x399   :  { %v715_v61 = vmul.f32 1.442695, %v703_v60 }
 0x39a   :  { %v695_v62 = vpop.xlane.xlu1 %694  ;;  %v692_v0 = vpop.xlane.xlu0 %691 }
 0x39b   :  { %3915 = vpow2.f32 %v715_v61  ;;  %v705_v1 = vsub.f32 %v4349_v19, %v695_v62  ;;  %v704_v4 = vsub.f32 %v4352_v22, %v692_v0  ;;  %v3858_v61 = vld [vmem:[%s4919_s5 + $0x8] sm:$0xff]  }
 0x39d   :  { %v719_v6 = vmul.f32 1.442695, %v705_v1  ;;  %v717_v7 = vmul.f32 1.442695, %v704_v4 }
 0x39e   :  { %v698_v8 = vpop.xlane.xlu0 %697  ;;  %v255_v15 = vpop.permute.xlu1 %254 }
 0x39f   :  { %3917 = vpow2.f32 %v719_v6  ;;  %v706_v11 = vsub.f32 %v4359_v29, %v698_v8  ;;  %v762_v22 = vpack.c.bf16 %v255_v15, %v255_v15 }
 0x3a0   :  { %3919 = vpow2.f32 %v717_v7  ;;  %v3859_v7 = vld [vmem:[%s4919_s5 + $0x10] sm:$0xff]  }
 0x3a1   :  { %v721_v18 = vmul.f32 1.442695, %v706_v11  ;;  %v1090_v34 = vsel %vm766_vm3, %v762_v22, 0 }
 0x3a2   :  { %v252_v63 = vpop.permute.xlu0 %251 }
 0x3a3   :  { %3921 = vpow2.f32 %v721_v18  ;;  %v761_v3 = vpack.c.bf16 %v252_v63, %v252_v63 }
 0x3a5   :  { %v3916_v20 = vpop.eup %3915  ;;  %v1044_v28 = vsel %vm766_vm3, %v761_v3, 0 }
 0x3a6   :  { %v751_v24 = vpack.c.bf16 %v3916_v20, %v3916_v20  ;;  %v735_v40 = vsel %vm674_vm7, %v3916_v20, 0.0 }
 0x3a8   :  { %3578 = vmatmul.mubr.msk.bf16.vlgmr.msra.gmra.mrb[24].mxu0 %vm674_vm7, %v751_v24  ;;  %v3860_v24 = vld [vmem:[%s4919_s5 + $0x18] sm:$0xff]  }
 0x3a9   :  { %v3918_v19 = vpop.eup %3917  ;;  %3588 = vmatpush3.bf16.msra.mxu0 %v1044_v28  ;;  %3589 = vmatprep.mubr.msk.bf16.mxu0 %vm4043_vm1, %v4039_v23 }
 0x3aa   :  { %v3920_v30 = vpop.eup %3919  ;;  %v741_v29 = vsel %vm674_vm7, %v3918_v19, 0.0  ;;  %3599 = vmatprep.subr.bf16.mxu0 %v4039_v23  ;;  %v753_v38 = vpack.c.bf16 %v3918_v19, %v3918_v19 }
 0x3ab   :  { %742 = vadd.xlane.f32.xlu0 %v741_v29  ;;  %v738_v31 = vsel %vm674_vm7, %v3920_v30, 0.0  ;;  %v752_v32 = vpack.c.bf16 %v3920_v30, %v3920_v30 }
 0x3ac   :  { %739 = vadd.xlane.f32.xlu1 %v738_v31 }
 0x3ad   :  { %v3922_v33 = vpop.eup %3921  ;;  %3584 = vmatmul.mubr.msk.bf16.vlgmr.msra.gmra.mrb[28].mxu1 %vm674_vm7, %v752_v32 }
 0x3ae   :  { %3594 = vmatpush3.bf16.msra.mxu1 %v1090_v34  ;;  %v744_v37 = vsel %vm674_vm7, %v3922_v33, 0.0  ;;  %3595 = vmatprep.mubr.msk.bf16.mxu1 %vm4043_vm1, %v4039_v23  ;;  %v754_v42 = vpack.c.bf16 %v3922_v33, %v3922_v33 }
 0x3af   :  { %745 = vadd.xlane.f32.xlu0 %v744_v37  ;;  %3611 = vmatprep.subr.bf16.mxu1 %v4039_v23 }
 0x3b0   :  { %733 = vadd.xlane.f32.xlu1 %v732_v39  ;;  %3590 = vmatmul.mubr.msk.bf16.vlgmr.msra.gmra.mrb[28].mxu0 %vm674_vm7, %v753_v38 }
 0x3b1   :  { %3607 = vmatprep.mubr.msk.bf16.mxu0 %vm4043_vm1, %v4039_v23  ;;  %3600 = vmatpush3.bf16.msra.mxu0 %v3857_v49 }
 0x3b2   :  { %3601 = vmatprep.subr.bf16.mxu0 %v4039_v23 }
 0x3b3   :  { %736 = vadd.xlane.f32.xlu0 %v735_v40 }
 0x3b4   :  { %724 = vadd.xlane.f32.xlu1 %v723_v41 }
 0x3b5   :  { %3596 = vmatmul.mubr.msk.bf16.vlgmr.msra.gmra.mrb[32].mxu1 %vm674_vm7, %v754_v42  ;;  %3602 = vmatpush3.bf16.msra.mxu0 %v3858_v61 }
 0x3b6   :  { %3619 = vmatprep.mubr.msk.bf16.mxu1 %vm4043_vm1, %v4039_v23  ;;  %3603 = vmatprep.subr.bf16.mxu0 %v4039_v23 }
 0x3b9   :  { %3604 = vmatpush3.bf16.msra.mxu0 %v3859_v7 }
 0x3ba   :  { %3605 = vmatprep.subr.bf16.mxu0 %v4039_v23 }
 0x3bd   :  { %3606 = vmatpush3.bf16.msra.mxu0 %v3860_v24  ;;  %v3997_v24 = vld [vmem:[%s4946_s26] sm:$0xff] }
 0x3be   :  { %3623 = vmatprep.subr.bf16.mxu0 %v4039_v23 }
 0x3d9   :  { %v4418_v45 = vpop.f32.mrb[16].mxu0 }
 0x3da   :  { %v3555_v46 = vpop.f32.mrb[17].mxu0 }
 0x3db   :  { %v807_v47 = vpop.f32.mrb[18].mxu0 }
 0x3dc   :  { %v3556_v48 = vpop.f32.mrb[19].mxu0 }
 0x3fb   :  { %v728_v25 = vpop.xlane.xlu0 %727 }
 0x3fc   :  { %3923 = vrcp.f32 %v728_v25 }
 0x3ff   :  { %v731_v58 = vpop.xlane.xlu0 %730 }
 0x406   :  { %v3924_v11 = vpop.eup %3923 }
 0x438   :  { %v743_v60 = vpop.xlane.xlu0 %742 }
 0x439   :  { %v740_v59 = vpop.xlane.xlu1 %739 }
 0x43a   :  { %3925 = vrcp.f32 %v740_v59 }
 0x43b   :  { %3927 = vrcp.f32 %v731_v58 }
 0x43c   :  { %3929 = vrcp.f32 %v743_v60  ;;  %v746_v62 = vpop.xlane.xlu0 %745 }
 0x43d   :  { %v734_v0 = vpop.xlane.xlu1 %733  ;;  %3931 = vrcp.f32 %v746_v62 }
 0x43e   :  { %3933 = vrcp.f32 %v734_v0 }
 0x442   :  { %v850_v10 = vpop.f32.mrb[20].mxu1 }
 0x443   :  { %v3561_v26 = vpop.f32.mrb[21].mxu1  ;;  %v1141_v3 = vmul.f32 %v3924_v11, %v850_v10 }
 0x444   :  { %v853_v50 = vpop.f32.mrb[22].mxu1  ;;  %v3926_v18 = vpop.eup %3925 }
 0x445   :  { %v3562_v35 = vpop.f32.mrb[23].mxu1  ;;  %v3928_v28 = vpop.eup %3927 }
 0x446   :  { %v896_v44 = vpop.f32.mrb[20].mxu0  ;;  %v3930_v22 = vpop.eup %3929 }
 0x447   :  { %v3567_v51 = vpop.f32.mrb[21].mxu0  ;;  %v1142_v32 = vmul.f32 %v3928_v28, %v896_v44  ;;  %v3932_v40 = vpop.eup %3931 }
 0x448   :  { %v899_v52 = vpop.f32.mrb[22].mxu0  ;;  %v3934_v41 = vpop.eup %3933 }
 0x449   :  { %v3568_v53 = vpop.f32.mrb[23].mxu0  ;;  %v725_v50 = vpop.xlane.xlu1 %724 }
 0x44a   :  { %v942_v54 = vpop.f32.mrb[24].mxu1  ;;  %v737_v35 = vpop.xlane.xlu0 %736  ;;  %3935 = vrcp.f32 %v725_v50 }
 0x44b   :  { %v3573_v55 = vpop.f32.mrb[25].mxu1  ;;  %v1143_v46 = vmul.f32 %v3934_v41, %v942_v54  ;;  %3937 = vrcp.f32 %v737_v35 }
 0x44c   :  { %v945_v56 = vpop.f32.mrb[26].mxu1 }
 0x44d   :  { %v3574_v57 = vpop.f32.mrb[27].mxu1 }
 0x454   :  { %v3936_v52 = vpop.eup %3935 }
 0x455   :  { %v3938_v56 = vpop.eup %3937  ;;  %v1140_v58 = vmul.f32 %v3936_v52, %v4418_v45  ;;  %v3253_v45 = vld [vmem:[%s4920_s6] ss:$0 sm:$0xff] }
 0x47b   :  { %v988_v1 = vpop.f32.mrb[24].mxu0 }
 0x47c   :  { %v3579_v4 = vpop.f32.mrb[25].mxu0  ;;  %v1144_v25 = vmul.f32 %v3938_v56, %v988_v1 }
 0x47d   :  { %v991_v6 = vpop.f32.mrb[26].mxu0 }
 0x47e   :  { %v3580_v8 = vpop.f32.mrb[27].mxu0 }
 0x480   :  { %v1034_v63 = vpop.f32.mrb[28].mxu1 }
 0x481   :  { %v1145_v20 = vmul.f32 %v3926_v18, %v1034_v63  ;;  %v3585_v15 = vpop.f32.mrb[29].mxu1 }
 0x482   :  { %v1037_v19 = vpop.f32.mrb[30].mxu1 }
 0x483   :  { %v3815_v30 = vpack.i.bf16 %v1145_v20, %v1141_v3  ;;  %v3586_v29 = vpop.f32.mrb[31].mxu1  ;;  %v1080_v31 = vpop.f32.mrb[28].mxu0 }
 0x484   :  { %v1146_v33 = vmul.f32 %v3930_v22, %v1080_v31  ;;  %v3591_v34 = vpop.f32.mrb[29].mxu0  ;;  %v3998_v22 = vld [vmem:[%s4946_s26 + $0x8] sm:$0xff] }
 0x485   :  { %3816 = vrot.lane.b32.xlu1 %v3815_v30, %s4939_s25  ;;  %v1083_v37 = vpop.f32.mrb[30].mxu0  ;;  %s4950_s25 = smov 48  }
 0x486   :  { %v3820_v38 = vpack.i.bf16 %v1146_v33, %v1142_v32  ;;  %v3592_v39 = vpop.f32.mrb[31].mxu0 }
 0x488   :  { %v1126_v42 = vpop.f32.mrb[32].mxu1  ;;  %3821 = vrot.lane.b32.xlu0 %v3820_v38, %s4938_s3  ;;  %s3042_s3 = sld [smem:[#allocation3]] }
 0x489   :  { %v1147_v47 = vmul.f32 %v3932_v40, %v1126_v42  ;;  %v3597_v48 = vpop.f32.mrb[33].mxu1 }
 0x48a   :  { %v1129_v49 = vpop.f32.mrb[34].mxu1  ;;  %v3863_v48 = vld [vmem:[%s4923_s9 + $0x10] sm:$0xff]  }
 0x48b   :  { %v3825_v10 = vpack.i.bf16 %v1147_v47, %v1143_v46  ;;  %v3598_v26 = vpop.f32.mrb[35].mxu1  ;;  %v3861_v46 = vld [vmem:[%s4923_s9] sm:$0xff]   ;;  %v3862_v47 = vld [vmem:[%s4923_s9 + $0x8] sm:$0xff]   ;;  %v3864_v49 = vld [vmem:[%s4923_s9 + $0x18] sm:$0xff]  }
 0x48c   :  { %3612 = vmatpush3.bf16.msra.mxu1 %v3861_v46 }
 0x48d   :  { %3826 = vrot.lane.b32.xlu1 %v3825_v10, %s4937_s27  ;;  %3613 = vmatprep.subr.bf16.mxu1 %v4039_v23 }
 0x490   :  { %3614 = vmatpush3.bf16.msra.mxu1 %v3862_v47 }
 0x491   :  { %3615 = vmatprep.subr.bf16.mxu1 %v4039_v23 }
 0x494   :  { %3616 = vmatpush3.bf16.msra.mxu1 %v3863_v48 }
 0x495   :  { %3617 = vmatprep.subr.bf16.mxu1 %v4039_v23 }
 0x498   :  { %3618 = vmatpush3.bf16.msra.mxu1 %v3864_v49  ;;  %v3267_v49 = vld [vmem:[%s4926_s12] ss:$0 sm:$0xff] }
 0x4f7   :  { %v3817_v44 = vpop.permute.xlu1 %3816 }
 0x4f8   :  { %v3819_v53 = vunpack.i.h.bf16 %v3817_v44  ;;  %v3818_v55 = vunpack.i.l.bf16 %v3817_v44 }
 0x4fa   :  { %v3822_v51 = vpop.permute.xlu0 %3821  ;;  %v1160_v60 = vsel %vm268_vm2, %v1140_v58, %v3818_v55  ;;  %v1177_v61 = vsel %vm268_vm2, %v1144_v25, %v3819_v53  ;;  %v3259_v53 = vld [vmem:[%s4921_s7] ss:$0 sm:$0xff] }
 0x4fb   :  { %v3824_v57 = vunpack.i.h.bf16 %v3822_v51  ;;  %v3823_v54 = vunpack.i.l.bf16 %v3822_v51  ;;  %v3260_v25 = vld [vmem:[%s4922_s8] ss:$0 sm:$0xff] }
 0x4fd   :  { %v1178_v4 = vsel %vm1161_vm11, %v1177_v61, %v3824_v57  ;;  %v1162_v6 = vsel %vm1161_vm11, %v1160_v60, %v3823_v54 }
 0x4ff   :  { %v3827_v59 = vpop.permute.xlu1 %3826 }
 0x500   :  { %v3829_v62 = vunpack.i.h.bf16 %v3827_v59  ;;  %v3828_v0 = vunpack.i.l.bf16 %v3827_v59 }
 0x502   :  { %v1164_v7 = vsel %vm1163_vm12, %v1162_v6, %v3828_v0  ;;  %v1179_v8 = vsel %vm1163_vm12, %v1178_v4, %v3829_v62  ;;  %v3865_v62 = vld [vmem:[%s4925_s11] sm:$0xff]   ;;  %v3866_v0 = vld [vmem:[%s4925_s11 + $0x8] sm:$0xff]   ;;  %v3867_v4 = vld [vmem:[%s4925_s11 + $0x10] sm:$0xff]  }
 0x503   :  { %v1188_v1 = vpack.c.bf16 %v1179_v8, %v1164_v7  ;;  %v3869_v6 = vld [vmem:[%s4925_s11 + $0x20] sm:$0xff]   ;;  %v3870_v7 = vld [vmem:[%s4925_s11 + $0x28] sm:$0xff]   ;;  %v3871_v8 = vld [vmem:[%s4925_s11 + $0x30] sm:$0xff]  }
 0x505   :  { %3608 = vmatmul.mubr.msk.bf16.vlgmr.msra.gmra.mrb[32].mxu0 %vm170_vm0, %v1188_v1  ;;  %v3872_v1 = vld [vmem:[%s4925_s11 + $0x38] sm:$0xff]  }
 0x506   :  { %3639 = vmatprep.mubr.msk.bf16.mxu0 %vm4043_vm1, %v4039_v23  ;;  %3624 = vmatpush3.bf16.msra.mxu0 %v3865_v62 }
 0x507   :  { %3625 = vmatprep.subr.bf16.mxu0 %v4039_v23 }
 0x50a   :  { %3626 = vmatpush3.bf16.msra.mxu0 %v3866_v0 }
 0x50b   :  { %3627 = vmatprep.subr.bf16.mxu0 %v4039_v23 }
 0x50e   :  { %3628 = vmatpush3.bf16.msra.mxu0 %v3867_v4 }
 0x50f   :  { %3629 = vmatprep.subr.bf16.mxu0 %v4039_v23 }
 0x5d8   :  { %v1257_v11 = vpop.f32.mrb[32].mxu0 }
 0x5d9   :  { %v1258_v18 = vadd.f32 %v3253_v45, %v1257_v11  ;;  %v3609_v63 = vpop.f32.mrb[33].mxu0 }
 0x5da   :  { %v1260_v3 = vpop.f32.mrb[34].mxu0 }
 0x5db   :  { %v1261_v20 = vadd.f32 %v3253_v45, %v1260_v3  ;;  %v3610_v15 = vpop.f32.mrb[35].mxu0  ;;  %v1264_v28 = vadd.f32 %v3997_v24, %v1258_v18  ;;  %v3261_v45 = vld [vmem:[%s4924_s10] ss:$0 sm:$0xff] }
 0x5dd   :  { %v1268_v19 = vsel %vm170_vm0, %v1264_v28, 0.0  ;;  %v1265_v30 = vadd.f32 %v3998_v22, %v1261_v20 }
 0x5de   :  { %1269 = vadd.xlane.f32.xlu1 %v1268_v19 }
 0x5df   :  { %v1271_v29 = vsel %vm170_vm0, %v1265_v30, 0.0 }
 0x5e0   :  { %1272 = vadd.xlane.f32.xlu0 %v1271_v29 }
 0x66b   :  { %v1270_v31 = vpop.xlane.xlu1 %1269 }
 0x66c   :  { %v1275_v32 = vmul.f32 0.015625, %v1270_v31 }
 0x66d   :  { %v1273_v33 = vpop.xlane.xlu0 %1272 }
 0x66e   :  { %v1277_v34 = vsub.f32 %v1264_v28, %v1275_v32  ;;  %v1276_v37 = vmul.f32 0.015625, %v1273_v33 }
 0x670   :  { %v1278_v38 = vsub.f32 %v1265_v30, %v1276_v37  ;;  %v1279_v39 = vmul.f32 %v1277_v34, %v1277_v34 }
 0x672   :  { %v1281_v40 = vsel %vm170_vm0, %v1279_v39, 0.0  ;;  %v1280_v41 = vmul.f32 %v1278_v38, %v1278_v38 }
 0x673   :  { %1282 = vadd.xlane.f32.xlu0 %v1281_v40 }
 0x674   :  { %v1284_v42 = vsel %vm170_vm0, %v1280_v41, 0.0 }
 0x675   :  { %1285 = vadd.xlane.f32.xlu1 %v1284_v42 }
 0x700   :  { %v1283_v10 = vpop.xlane.xlu0 %1282 }
 0x701   :  { %v1287_v26 = vmul.f32 0.015625, %v1283_v10 }
 0x702   :  { %v1286_v50 = vpop.xlane.xlu1 %1285 }
 0x703   :  { %v1289_v35 = vadd.f32 1e-05, %v1287_v26  ;;  %v1288_v44 = vmul.f32 0.015625, %v1286_v50 }
 0x705   :  { %3939 = vrsqrt.f32 %v1289_v35  ;;  %v1290_v51 = vadd.f32 1e-05, %v1288_v44 }
 0x707   :  { %3941 = vrsqrt.f32 %v1290_v51 }
 0x70f   :  { %v3940_v52 = vpop.eup %3939 }
 0x710   :  { %v1293_v55 = vmul.f32 %v3940_v52, %v1277_v34 }
 0x711   :  { %v3942_v56 = vpop.eup %3941 }
 0x712   :  { %v1301_v57 = vmul.f32 %v3259_v53, %v1293_v55  ;;  %v1294_v54 = vmul.f32 %v3942_v56, %v1278_v38 }
 0x714   :  { %v1302_v58 = vmul.f32 %v3259_v53, %v1294_v54  ;;  %v4483_v59 = vadd.f32 %v3260_v25, %v1301_v57 }
 0x716   :  { %v4485_v60 = vadd.f32 %v3260_v25, %v1302_v58 }
 0x718   :  { %v1319_v61 = vpack.c.bf16 %v4485_v60, %v4483_v59 }
 0x71a   :  { %3620 = vmatmul.mubr.msk.bf16.vlgmr.msra.gmra.mrb[36].mxu1 %vm170_vm0, %v1319_v61 }
 0x71b   :  { %1670 = vmatprep.mubr.bf16.mxu1 %v4038_v2  ;;  %v3868_v2 = vld [vmem:[%s4925_s11 + $0x18] sm:$0xff]  }
 0x71c   :  { %3630 = vmatpush3.bf16.msra.mxu0 %v3868_v2 }
 0x71d   :  { %3631 = vmatprep.subr.bf16.mxu0 %v4039_v23 }
 0x720   :  { %3632 = vmatpush3.bf16.msra.mxu0 %v3869_v6  ;;  %v3873_v6 = vld [vmem:[%s4945_s24 + $0x40] ss:$8 sps:$4 sm:$0xff]  }
 0x721   :  { %3633 = vmatprep.subr.bf16.mxu0 %v4039_v23 }
 0x724   :  { %3634 = vmatpush3.bf16.msra.mxu0 %v3870_v7  ;;  %v3878_v7 = vld [vmem:[%s4945_s24 + $0x54] ss:$8 sps:$4 sm:$0xff]  }
 0x725   :  { %3635 = vmatprep.subr.bf16.mxu0 %v4039_v23 }
 0x728   :  { %3636 = vmatpush3.bf16.msra.mxu0 %v3871_v8  ;;  %v3876_v8 = vld [vmem:[%s4945_s24 + $0x50] ss:$8 sps:$4 sm:$0xff]  }
 0x729   :  { %3637 = vmatprep.subr.bf16.mxu0 %v4039_v23 }
 0x72c   :  { %3638 = vmatpush3.bf16.msra.mxu0 %v3872_v1  ;;  %v3881_v1 = vld [vmem:[%s4945_s24 + $0x64] ss:$8 sps:$4 sm:$0xff]  }
 0x72d   :  { %3655 = vmatprep.subr.bf16.mxu0 %v4039_v23 }
 0x7ed   :  { %v1388_v11 = vpop.f32.mrb[36].mxu1 }
 0x7ee   :  { %v1389_v18 = vadd.f32 %v3261_v45, %v1388_v11  ;;  %v3621_v63 = vpop.f32.mrb[37].mxu1  ;;  %v3882_v11 = vld [vmem:[%s4945_s24 + $0x70] ss:$8 sps:$4 sm:$0xff]  }
 0x7ef   :  { %v1391_v3 = vpop.f32.mrb[38].mxu1 }
 0x7f0   :  { %v1395_v20 = vmul.f32 %v1389_v18, %v1389_v18  ;;  %v1392_v15 = vadd.f32 %v3261_v45, %v1391_v3  ;;  %v3622_v24 = vpop.f32.mrb[39].mxu1  ;;  %v3879_v45 = vld [vmem:[%s4945_s24 + $0x60] ss:$8 sps:$4 sm:$0xff]  }
 0x7f2   :  { %v1397_v28 = vmul.f32 %v1395_v20, %v1389_v18  ;;  %v1396_v19 = vmul.f32 %v1392_v15, %v1392_v15 }
 0x7f4   :  { %v1399_v22 = vmul.f32 0.044715, %v1397_v28  ;;  %v1398_v30 = vmul.f32 %v1396_v19, %v1392_v15 }
 0x7f6   :  { %v1401_v29 = vadd.f32 %v1399_v22, %v1389_v18  ;;  %v1400_v31 = vmul.f32 0.044715, %v1398_v30  ;;  %v3276_v22 = vld [vmem:[%s4927_s13] ss:$0 sm:$0xff] }
 0x7f8   :  { %v1403_v32 = vmul.f32 0.7978846, %v1401_v29  ;;  %v1402_v33 = vadd.f32 %v1400_v31, %v1392_v15 }
 0x7fa   :  { %3943 = vtanh.f32 %v1403_v32  ;;  %v1404_v34 = vmul.f32 0.7978846, %v1402_v33  ;;  %v3277_v33 = vld [vmem:[%s4928_s14] ss:$0 sm:$0xff] }
 0x7fc   :  { %3945 = vtanh.f32 %v1404_v34 }
 0x804   :  { %v3944_v37 = vpop.eup %3943 }
 0x805   :  { %v1407_v38 = vadd.f32 1.0, %v3944_v37 }
 0x806   :  { %v3946_v39 = vpop.eup %3945 }
 0x807   :  { %v1409_v40 = vmul.f32 0.5, %v1407_v38  ;;  %v1408_v41 = vadd.f32 1.0, %v3946_v39 }
 0x809   :  { %v1410_v42 = vmul.f32 0.5, %v1408_v41  ;;  %v1411_v46 = vmul.f32 %v1409_v40, %v1389_v18  ;;  %v3884_v18 = vld [vmem:[%s4945_s24 + $0x74] ss:$8 sps:$4 sm:$0xff]   ;;  %v3286_v40 = vld [vmem:[%s4918_s4 + $0x2] sm:$0x3] }
 0x80a   :  { %v1588_v41 = vrot.slane %v3286_v40, %v122_v14 }
 0x80b   :  { %v1412_v47 = vmul.f32 %v1410_v42, %v1392_v15 }
 0x80d   :  { %v1429_v48 = vpack.c.bf16 %v1412_v47, %v1411_v46 }
 0x80f   :  { %3640 = vmatmul.mubr.bf16.vlgmr.msra.gmra.mrb[36].mxu0 %v1429_v48  ;;  %v1592_v48 = vrot.slane %v3286_v40, %v126_v17 }
 0x810   :  { %3657 = vmatprep.mubr.msk.bf16.mxu0 %vm4043_vm1, %v4039_v23 }
 0x8e2   :  { %v1519_v10 = vpop.f32.mrb[36].mxu0 }
 0x8e3   :  { %v1520_v26 = vadd.f32 %v3267_v49, %v1519_v10  ;;  %v3641_v50 = vpop.f32.mrb[37].mxu0 }
 0x8e4   :  { %v1522_v35 = vpop.f32.mrb[38].mxu0 }
 0x8e5   :  { %v1523_v44 = vadd.f32 %v3267_v49, %v1522_v35  ;;  %v3642_v51 = vpop.f32.mrb[39].mxu0  ;;  %v1526_v52 = vadd.f32 %v1520_v26, %v4483_v59 }
 0x8e7   :  { %v1530_v53 = vsel %vm170_vm0, %v1526_v52, 0.0  ;;  %v1527_v55 = vadd.f32 %v1523_v44, %v4485_v60  ;;  %v3875_v60 = vld [vmem:[%s4945_s24 + $0x44] ss:$8 sps:$4 sm:$0xff]  }
 0x8e8   :  { %1531 = vadd.xlane.f32.xlu0 %v1530_v53  ;;  %1638 = vmatprep.subr.bf16.mxu1 %v3875_v60 }
 0x8e9   :  { %v1533_v56 = vsel %vm170_vm0, %v1527_v55, 0.0  ;;  %1639 = vmatpush1.bf16.msra.mxu1 %v3873_v6 }
 0x8ea   :  { %1534 = vadd.xlane.f32.xlu1 %v1533_v56  ;;  %1640 = vmatprep.subr.bf16.mxu1 %v3878_v7 }
 0x8ed   :  { %1641 = vmatpush1.bf16.msra.mxu1 %v3876_v8 }
 0x8ee   :  { %1642 = vmatprep.subr.bf16.mxu1 %v3881_v1 }
 0x8f1   :  { %1643 = vmatpush1.bf16.msra.mxu1 %v3879_v45 }
 0x8f2   :  { %1644 = vmatprep.subr.bf16.mxu1 %v3884_v18 }
 0x8f5   :  { %1645 = vmatpush1.bf16.msra.mxu1 %v3882_v11 }
 0x8f6   :  { %3643 = vmatprep.subr.bf16.mxu1 %v4039_v23 }
 0x975   :  { %v1532_v57 = vpop.xlane.xlu0 %1531 }
 0x976   :  { %v1536_v54 = vmul.f32 0.015625, %v1532_v57 }
 0x977   :  { %v1535_v25 = vpop.xlane.xlu1 %1534 }
 0x978   :  { %v1538_v58 = vsub.f32 %v1526_v52, %v1536_v54  ;;  %v1537_v61 = vmul.f32 0.015625, %v1535_v25 }
 0x97a   :  { %v1539_v62 = vsub.f32 %v1527_v55, %v1537_v61  ;;  %v1540_v0 = vmul.f32 %v1538_v58, %v1538_v58 }
 0x97c   :  { %v1542_v4 = vsel %vm170_vm0, %v1540_v0, 0.0  ;;  %v1541_v2 = vmul.f32 %v1539_v62, %v1539_v62 }
 0x97d   :  { %1543 = vadd.xlane.f32.xlu0 %v1542_v4 }
 0x97e   :  { %v1545_v59 = vsel %vm170_vm0, %v1541_v2, 0.0 }
 0x97f   :  { %1546 = vadd.xlane.f32.xlu1 %v1545_v59 }
 0xa0a   :  { %v1544_v63 = vpop.xlane.xlu0 %1543 }
 0xa0b   :  { %v1548_v3 = vmul.f32 0.015625, %v1544_v63 }
 0xa0c   :  { %v1547_v20 = vpop.xlane.xlu1 %1546 }
 0xa0d   :  { %v1550_v15 = vadd.f32 1e-05, %v1548_v3  ;;  %v1549_v24 = vmul.f32 0.015625, %v1547_v20 }
 0xa0f   :  { %3947 = vrsqrt.f32 %v1550_v15  ;;  %v1551_v28 = vadd.f32 1e-05, %v1549_v24 }
 0xa11   :  { %3949 = vrsqrt.f32 %v1551_v28 }
 0xa19   :  { %v3948_v19 = vpop.eup %3947 }
 0xa1a   :  { %v1554_v30 = vmul.f32 %v3948_v19, %v1538_v58 }
 0xa1b   :  { %v3950_v29 = vpop.eup %3949 }
 0xa1c   :  { %v1562_v31 = vmul.f32 %v3276_v22, %v1554_v30  ;;  %v1555_v32 = vmul.f32 %v3950_v29, %v1539_v62 }
 0xa1e   :  { %v1563_v34 = vmul.f32 %v3276_v22, %v1555_v32  ;;  %v4568_v37 = vadd.f32 %v3277_v33, %v1562_v31 }
 0xa20   :  { %v4570_v38 = vadd.f32 %v3277_v33, %v1563_v34 }
 0xa22   :  { %v1581_v39 = vpack.c.bf16 %v4570_v38, %v4568_v37 }
 0xa24   :  { %3295 = vmatmul.mubr.msk.bf16.vlgmr.msra.gmra.mrb[40].mxu1 %vm170_vm0, %v1581_v39 }
 0xa25   :  { %3645 = vmatprep.mubr.msk.bf16.mxu1 %vm4043_vm1, %v4039_v23 }
 0xaf7   :  { %v1672_v42 = vpop.f32.mrb[40].mxu1 }
 0xaf8   :  { %v1673_v46 = vadd.f32 %v1672_v42, %v1588_v41  ;;  %v1674_v47 = vpop.f32.mrb[41].mxu1 }
 0xaf9   :  { %v1676_v49 = vpop.f32.mrb[42].mxu1  ;;  %v4599_v61 = vadd.f32 %v1674_v47, %v1592_v48 }
 0xafa   :  { %v1678_v10 = vpop.f32.mrb[43].mxu1  ;;  %1685 = vrot.lane.b32.xlu1 %v1673_v46, %s4042_s21  ;;  %1682 = vrot.lane.b32.xlu0 %v1673_v46, %s4041_s20  ;;  %v1677_v50 = vadd.f32 %v1676_v49, %v1588_v41  ;;  %v1721_v14 = vpack.c.bf16 %v1673_v46, %v1673_v46 }
 0xafb   :  { %v4586_v26 = vadd.f32 %v1678_v10, %v1592_v48  ;;  %v2217_v20 = vpack.c.bf16 %v4599_v61, %v4599_v61 }
 0xafc   :  { %v1725_v55 = vpack.c.bf16 %v1677_v50, %v1677_v50 }
 0xafd   :  { %v2229_v24 = vsel %vm766_vm3, %v2217_v20, 0 }
 0xafe   :  { %1688 = vrot.lane.b32.xlu1 %v1673_v46, %s4040_s30  ;;  %1692 = vrot.lane.b32.xlu0 %v1677_v50, %s4041_s20 }
 0xb02   :  { %1695 = vrot.lane.b32.xlu1 %v1677_v50, %s4042_s21  ;;  %1698 = vrot.lane.b32.xlu0 %v1677_v50, %s4040_s30 }
 0xb06   :  { %1730 = vrot.lane.b32.xlu1 %v1721_v14, %s4044_s1 }
 0xb6c   :  { %v1686_v13 = vpop.permute.xlu1 %1685  ;;  %v1683_v17 = vpop.permute.xlu0 %1682 }
 0xb6d   :  { %v1723_v35 = vpack.c.bf16 %v1686_v13, %v1686_v13  ;;  %v1722_v44 = vpack.c.bf16 %v1683_v17, %v1683_v17 }
 0xb6f   :  { %1779 = vrot.lane.b32.xlu0 %v1722_v44, %s4044_s1  ;;  %1828 = vrot.lane.b32.xlu1 %v1723_v35, %s4044_s1 }
 0xb70   :  { %v1689_v51 = vpop.permute.xlu1 %1688  ;;  %v1693_v52 = vpop.permute.xlu0 %1692 }
 0xb71   :  { %v1724_v53 = vpack.c.bf16 %v1689_v51, %v1689_v51  ;;  %v1726_v57 = vpack.c.bf16 %v1693_v52, %v1693_v52 }
 0xb73   :  { %1877 = vrot.lane.b32.xlu0 %v1724_v53, %s4044_s1  ;;  %1926 = vrot.lane.b32.xlu1 %v1725_v55, %s4044_s1 }
 0xb74   :  { %v1696_v56 = vpop.permute.xlu1 %1695  ;;  %v1699_v25 = vpop.permute.xlu0 %1698 }
 0xb75   :  { %v1727_v54 = vpack.c.bf16 %v1696_v56, %v1696_v56  ;;  %v1728_v62 = vpack.c.bf16 %v1699_v25, %v1699_v25 }
 0xb77   :  { %1975 = vrot.lane.b32.xlu0 %v1726_v57, %s4044_s1  ;;  %2024 = vrot.lane.b32.xlu1 %v1727_v54, %s4044_s1 }
 0xb78   :  { %v1731_v58 = vpop.permute.xlu1 %1730 }
 0xb79   :  { %v1736_v0 = vsel %vm268_vm2, %v1731_v58, 0 }
 0xb7a   :  { %3644 = vmatpush3.bf16.xpose.msra.mxu1 %v1736_v0 }
 0xb7b   :  { %2073 = vrot.lane.b32.xlu0 %v1728_v62, %s4044_s1  ;;  %1705 = vrot.lane.b32.xlu1 %v4599_v61, %s4042_s21  ;;  %s4948_s1 = smov 16  }
 0xb7c   :  { %3649 = vmatprep.subr.bf16.mxu1 %v4039_v23 }
 0xb7f   :  { %1702 = vrot.lane.b32.xlu0 %v4599_v61, %s4041_s20 }
 0xb81   :  { %3646 = vmatmul.mubr.msk.bf16.vlgmr.msra.gmra.mrb[44].mxu1 %vm268_vm2, %v1721_v14 }
 0xb82   :  { %3651 = vmatprep.mubr.msk.bf16.mxu1 %vm4043_vm1, %v4039_v23 }
 0xbe1   :  { %v1780_v4 = vpop.permute.xlu0 %1779  ;;  %v1829_v2 = vpop.permute.xlu1 %1828 }
 0xbe2   :  { %v1785_v59 = vsel %vm268_vm2, %v1780_v4, 0  ;;  %v1834_v60 = vsel %vm268_vm2, %v1829_v2, 0 }
 0xbe3   :  { %3650 = vmatpush3.bf16.xpose.msra.mxu1 %v1785_v59  ;;  %3656 = vmatpush3.bf16.xpose.msra.mxu0 %v1834_v60 }
 0xbe4   :  { %3661 = vmatprep.subr.bf16.mxu1 %v4039_v23  ;;  %3667 = vmatprep.subr.bf16.mxu0 %v4039_v23 }
 0xbe5   :  { %v1878_v6 = vpop.permute.xlu0 %1877  ;;  %v1927_v7 = vpop.permute.xlu1 %1926 }
 0xbe6   :  { %v1883_v8 = vsel %vm268_vm2, %v1878_v6, 0  ;;  %v1932_v1 = vsel %vm268_vm2, %v1927_v7, 0 }
 0xbe9   :  { %v1976_v45 = vpop.permute.xlu0 %1975  ;;  %v2025_v11 = vpop.permute.xlu1 %2024 }
 0xbea   :  { %3652 = vmatmul.mubr.msk.bf16.vlgmr.msra.gmra.mrb[48].mxu1 %vm268_vm2, %v1722_v44  ;;  %3658 = vmatmul.mubr.msk.bf16.vlgmr.msra.gmra.mrb[40].mxu0 %vm268_vm2, %v1723_v35  ;;  %v1981_v18 = vsel %vm268_vm2, %v1976_v45, 0  ;;  %v2030_v63 = vsel %vm268_vm2, %v2025_v11, 0 }
 0xbeb   :  { %3662 = vmatpush3.bf16.xpose.msra.mxu1 %v1883_v8  ;;  %3668 = vmatpush3.bf16.xpose.msra.mxu0 %v1932_v1 }
 0xbec   :  { %3663 = vmatprep.mubr.msk.bf16.mxu1 %vm4043_vm1, %v4039_v23  ;;  %3669 = vmatprep.mubr.msk.bf16.mxu0 %vm4043_vm1, %v4039_v23 }
 0xbed   :  { %3673 = vmatprep.subr.bf16.mxu1 %v4039_v23  ;;  %3679 = vmatprep.subr.bf16.mxu0 %v4039_v23  ;;  %v2074_v3 = vpop.permute.xlu0 %2073  ;;  %v1706_v20 = vpop.permute.xlu1 %1705 }
 0xbee   :  { %v2079_v15 = vsel %vm268_vm2, %v2074_v3, 0 }
 0xbf1   :  { %v1703_v28 = vpop.permute.xlu0 %1702 }
 0xbf2   :  { %3664 = vmatmul.mubr.msk.bf16.vlgmr.msra.gmra.mrb[52].mxu1 %vm268_vm2, %v1724_v53  ;;  %3670 = vmatmul.mubr.msk.bf16.vlgmr.msra.gmra.mrb[44].mxu0 %vm268_vm2, %v1725_v55  ;;  %v2218_v19 = vpack.c.bf16 %v1703_v28, %v1703_v28 }
 0xbf3   :  { %3674 = vmatpush3.bf16.xpose.msra.mxu1 %v1981_v18  ;;  %3680 = vmatpush3.bf16.xpose.msra.mxu0 %v2030_v63 }
 0xbf4   :  { %3675 = vmatprep.mubr.msk.bf16.mxu1 %vm4043_vm1, %v4039_v23  ;;  %3681 = vmatprep.mubr.msk.bf16.mxu0 %vm4043_vm1, %v4039_v23  ;;  %v2275_v22 = vsel %vm766_vm3, %v2218_v19, 0  ;;  %v2219_v19 = vpack.c.bf16 %v1706_v20, %v1706_v20 }
 0xbf5   :  { %3685 = vmatprep.subr.bf16.mxu1 %v4039_v23  ;;  %3691 = vmatprep.subr.bf16.mxu0 %v4039_v23 }
 0xbfa   :  { %3676 = vmatmul.mubr.msk.bf16.vlgmr.msra.gmra.mrb[56].mxu1 %vm268_vm2, %v1726_v57  ;;  %3682 = vmatmul.mubr.msk.bf16.vlgmr.msra.gmra.mrb[48].mxu0 %vm268_vm2, %v1727_v54 }
 0xbfb   :  { %3686 = vmatpush3.bf16.xpose.msra.mxu1 %v2079_v15  ;;  %3692 = vmatpush3.bf16.msra.mxu0 %v2229_v24 }
 0xbfc   :  { %3687 = vmatprep.mubr.msk.bf16.mxu1 %vm4043_vm1, %v4039_v23  ;;  %3697 = vmatprep.subr.bf16.mxu1 %v4039_v23 }
 0xbfd   :  { %3693 = vmatprep.mubr.msk.bf16.mxu0 %vm4043_vm1, %v4039_v23  ;;  %3703 = vmatprep.subr.bf16.mxu0 %v4039_v23 }
 0xc02   :  { %3688 = vmatmul.mubr.msk.bf16.vlgmr.msra.gmra.mrb[60].mxu1 %vm268_vm2, %v1728_v62 }
 0xc03   :  { %3698 = vmatpush3.bf16.msra.mxu1 %v2275_v22  ;;  %3699 = vmatprep.mubr.msk.bf16.mxu1 %vm4043_vm1, %v4039_v23 }
 0xc04   :  { %3709 = vmatprep.subr.bf16.mxu1 %v4039_v23 }
 0xc54   :  { %v1772_v30 = vpop.f32.mrb[44].mxu1 }
 0xc55   :  { %v2121_v29 = vmul.f32 0.25, %v1772_v30  ;;  %v3647_v31 = vpop.f32.mrb[45].mxu1 }
 0xc56   :  { %v1775_v32 = vpop.f32.mrb[46].mxu1  ;;  %v2321_v31 = vsel %vm766_vm3, %v2219_v19, 0 }
 0xc57   :  { %v3648_v33 = vpop.f32.mrb[47].mxu1  ;;  %v2129_v34 = vadd.f32 %v2121_v29, %v4280_v5 }
 0xc59   :  { %v2137_v39 = vsel %vm674_vm7, %v2129_v34, -inf }
 0xc5a   :  { %2138 = vmax.xlane.f32.xlu1 %v2137_v39 }
 0xc6b   :  { %1708 = vrot.lane.b32.xlu1 %v4599_v61, %s4040_s30 }
 0xcbd   :  { %v1821_v40 = vpop.f32.mrb[48].mxu1  ;;  %v1870_v41 = vpop.f32.mrb[40].mxu0 }
 0xcbe   :  { %v2122_v42 = vmul.f32 0.25, %v1821_v40  ;;  %v2123_v46 = vmul.f32 0.25, %v1870_v41  ;;  %v3653_v47 = vpop.f32.mrb[49].mxu1  ;;  %v3659_v48 = vpop.f32.mrb[41].mxu0 }
 0xcbf   :  { %v1824_v49 = vpop.f32.mrb[50].mxu1  ;;  %v1873_v10 = vpop.f32.mrb[42].mxu0 }
 0xcc0   :  { %v3654_v50 = vpop.f32.mrb[51].mxu1  ;;  %v3660_v14 = vpop.f32.mrb[43].mxu0  ;;  %v4657_v13 = vadd.f32 %v2122_v42, %v4290_v16  ;;  %v4662_v17 = vadd.f32 %v2123_v46, %v4298_v27 }
 0xcc2   :  { %v2140_v5 = vsel %vm674_vm7, %v4657_v13, -inf  ;;  %v2143_v55 = vsel %vm674_vm7, %v4662_v17, -inf }
 0xcc3   :  { %2141 = vmax.xlane.f32.xlu0 %v2140_v5 }
 0xcc5   :  { %v1919_v35 = vpop.f32.mrb[52].mxu1  ;;  %v1968_v44 = vpop.f32.mrb[44].mxu0 }
 0xcc6   :  { %v2124_v51 = vmul.f32 0.25, %v1919_v35  ;;  %v3665_v52 = vpop.f32.mrb[53].mxu1  ;;  %v3671_v53 = vpop.f32.mrb[45].mxu0  ;;  %v2125_v28 = vmul.f32 0.25, %v1968_v44 }
 0xcc7   :  { %v1922_v56 = vpop.f32.mrb[54].mxu1  ;;  %2144 = vmax.xlane.f32.xlu0 %v2143_v55  ;;  %v1971_v57 = vpop.f32.mrb[46].mxu0 }
 0xcc8   :  { %v3666_v16 = vpop.f32.mrb[55].mxu1  ;;  %v3672_v54 = vpop.f32.mrb[47].mxu0  ;;  %v2132_v25 = vadd.f32 %v2124_v51, %v4308_v36  ;;  %v4684_v29 = vadd.f32 %v2125_v28, %v4327_v9 }
 0xcca   :  { %v2146_v58 = vsel %vm674_vm7, %v2132_v25, -inf  ;;  %v2149_v32 = vsel %vm674_vm7, %v4684_v29, -inf }
 0xccb   :  { %2147 = vmax.xlane.f32.xlu1 %v2146_v58 }
 0xccd   :  { %v2017_v27 = vpop.f32.mrb[56].mxu1  ;;  %v2066_v61 = vpop.f32.mrb[48].mxu0 }
 0xcce   :  { %v2126_v62 = vmul.f32 0.25, %v2017_v27  ;;  %v3677_v0 = vpop.f32.mrb[57].mxu1  ;;  %v3683_v4 = vpop.f32.mrb[49].mxu0 }
 0xccf   :  { %v2020_v2 = vpop.f32.mrb[58].mxu1  ;;  %v2069_v59 = vpop.f32.mrb[50].mxu0 }
 0xcd0   :  { %v3678_v60 = vpop.f32.mrb[59].mxu1  ;;  %v3684_v6 = vpop.f32.mrb[51].mxu0  ;;  %v2134_v7 = vadd.f32 %v2126_v62, %v4334_v12 }
 0xcd2   :  { %v2152_v8 = vsel %vm674_vm7, %v2134_v7, -inf }
 0xcd3   :  { %2153 = vmax.xlane.f32.xlu1 %v2152_v8 }
 0xcd5   :  { %v2115_v1 = vpop.f32.mrb[60].mxu1 }
 0xcd6   :  { %v2128_v45 = vmul.f32 0.25, %v2115_v1  ;;  %v3689_v36 = vpop.f32.mrb[61].mxu1 }
 0xcd7   :  { %v2118_v11 = vpop.f32.mrb[62].mxu1 }
 0xcd8   :  { %v3690_v18 = vpop.f32.mrb[63].mxu1  ;;  %v4671_v63 = vadd.f32 %v2128_v45, %v4342_v21  ;;  %v2127_v21 = vmul.f32 0.25, %v2066_v61 }
 0xcda   :  { %v2158_v3 = vsel %vm674_vm7, %v4671_v63, -inf  ;;  %v4693_v33 = vadd.f32 %v2127_v21, %v4331_v43 }
 0xcdb   :  { %2159 = vmax.xlane.f32.xlu1 %v2158_v3 }
 0xcdc   :  { %v2155_v9 = vsel %vm674_vm7, %v4693_v33, -inf }
 0xcdd   :  { %1712 = vrot.lane.b32.xlu0 %v4586_v26, %s4041_s20 }
 0xce7   :  { %v2139_v12 = vpop.xlane.xlu1 %2138 }
 0xce8   :  { %v2161_v15 = vsub.f32 %v2129_v34, %v2139_v12 }
 0xcea   :  { %v2169_v24 = vmul.f32 1.442695, %v2161_v15 }
 0xceb   :  { %v1709_v41 = vpop.permute.xlu1 %1708 }
 0xcec   :  { %3951 = vpow2.f32 %v2169_v24  ;;  %1715 = vrot.lane.b32.xlu1 %v4586_v26, %s4042_s21  ;;  %v2220_v10 = vpack.c.bf16 %v1709_v41, %v1709_v41 }
 0xcf6   :  { %v4679_v22 = vpop.eup %3951 }
 0xcf7   :  { %v2209_v30 = vpack.c.bf16 %v4679_v22, %v4679_v22  ;;  %v2185_v0 = vsel %vm674_vm7, %v4679_v22, 0.0 }
 0xcf9   :  { %3694 = vmatmul.mubr.msk.bf16.vlgmr.msra.gmra.mrb[52].mxu0 %vm674_vm7, %v2209_v30 }
 0xcfa   :  { %3704 = vmatpush3.bf16.msra.mxu0 %v2321_v31  ;;  %3705 = vmatprep.mubr.msk.bf16.mxu0 %vm4043_vm1, %v4039_v23 }
 0xcfb   :  { %3715 = vmatprep.subr.bf16.mxu0 %v4039_v23 }
 0xcfc   :  { %2150 = vmax.xlane.f32.xlu0 %v2149_v32 }
 0xd00   :  { %2156 = vmax.xlane.f32.xlu0 %v2155_v9 }
 0xd16   :  { %1718 = vrot.lane.b32.xlu0 %v4586_v26, %s4040_s30 }
 0xd50   :  { %v2142_v34 = vpop.xlane.xlu0 %2141 }
 0xd51   :  { %v2162_v39 = vsub.f32 %v4657_v13, %v2142_v34  ;;  %v2367_v13 = vsel %vm766_vm3, %v2220_v10, 0 }
 0xd53   :  { %v2171_v40 = vmul.f32 1.442695, %v2162_v39 }
 0xd54   :  { %v2145_v42 = vpop.xlane.xlu0 %2144 }
 0xd55   :  { %3953 = vpow2.f32 %v2171_v40  ;;  %v2163_v43 = vsub.f32 %v4662_v17, %v2145_v42  ;;  %v2221_v17 = vpack.c.bf16 %v4586_v26, %v4586_v26 }
 0xd57   :  { %v2173_v46 = vmul.f32 1.442695, %v2163_v43  ;;  %v2413_v16 = vsel %vm766_vm3, %v2221_v17, 0 }
 0xd58   :  { %v2148_v47 = vpop.xlane.xlu1 %2147  ;;  %v1713_v52 = vpop.permute.xlu0 %1712 }
 0xd59   :  { %3955 = vpow2.f32 %v2173_v46  ;;  %v2164_v48 = vsub.f32 %v2132_v25, %v2148_v47  ;;  %v2222_v57 = vpack.c.bf16 %v1713_v52, %v1713_v52 }
 0xd5b   :  { %v2175_v49 = vmul.f32 1.442695, %v2164_v48  ;;  %v2459_v25 = vsel %vm766_vm3, %v2222_v57, 0 }
 0xd5d   :  { %3957 = vpow2.f32 %v2175_v49 }
 0xd5f   :  { %v3954_v50 = vpop.eup %3953 }
 0xd60   :  { %v2154_v14 = vpop.xlane.xlu1 %2153  ;;  %v2188_v5 = vsel %vm674_vm7, %v3954_v50, 0.0  ;;  %v2210_v35 = vpack.c.bf16 %v3954_v50, %v3954_v50 }
 0xd61   :  { %v2166_v44 = vsub.f32 %v2134_v7, %v2154_v14  ;;  %2189 = vadd.xlane.f32.xlu1 %v2188_v5 }
 0xd62   :  { %3700 = vmatmul.mubr.msk.bf16.vlgmr.msra.gmra.mrb[64].mxu1 %vm674_vm7, %v2210_v35  ;;  %v3885_v35 = vld [vmem:[%s4919_s5 + $0x20] sm:$0xff]  }
 0xd63   :  { %v3956_v51 = vpop.eup %3955  ;;  %v2179_v53 = vmul.f32 1.442695, %v2166_v44  ;;  %3710 = vmatpush3.bf16.msra.mxu1 %v2367_v13  ;;  %3711 = vmatprep.mubr.msk.bf16.mxu1 %vm4043_vm1, %v4039_v23  ;;  %v3886_v13 = vld [vmem:[%s4919_s5 + $0x28] sm:$0xff]  }
 0xd64   :  { %v2191_v55 = vsel %vm674_vm7, %v3956_v51, 0.0  ;;  %v2211_v56 = vpack.c.bf16 %v3956_v51, %v3956_v51  ;;  %3721 = vmatprep.subr.bf16.mxu1 %v4039_v23 }
 0xd65   :  { %3959 = vpow2.f32 %v2179_v53  ;;  %2192 = vadd.xlane.f32.xlu0 %v2191_v55 }
 0xd66   :  { %3706 = vmatmul.mubr.msk.bf16.vlgmr.msra.gmra.mrb[56].mxu0 %vm674_vm7, %v2211_v56 }
 0xd67   :  { %v3958_v26 = vpop.eup %3957  ;;  %3716 = vmatpush3.bf16.msra.mxu0 %v2413_v16  ;;  %3717 = vmatprep.mubr.msk.bf16.mxu0 %vm4043_vm1, %v4039_v23 }
 0xd68   :  { %v2212_v54 = vpack.c.bf16 %v3958_v26, %v3958_v26  ;;  %3727 = vmatprep.subr.bf16.mxu0 %v4039_v23  ;;  %v2194_v62 = vsel %vm674_vm7, %v3958_v26, 0.0  ;;  %v2160_v4 = vpop.xlane.xlu1 %2159 }
 0xd69   :  { %v2168_v2 = vsub.f32 %v4671_v63, %v2160_v4 }
 0xd6a   :  { %3712 = vmatmul.mubr.msk.bf16.vlgmr.msra.gmra.mrb[68].mxu1 %vm674_vm7, %v2212_v54 }
 0xd6b   :  { %3722 = vmatpush3.bf16.msra.mxu1 %v2459_v25  ;;  %3723 = vmatprep.mubr.msk.bf16.mxu1 %vm4043_vm1, %v4039_v23  ;;  %v2183_v59 = vmul.f32 1.442695, %v2168_v2 }
 0xd6c   :  { %3733 = vmatprep.subr.bf16.mxu1 %v4039_v23  ;;  %v1716_v3 = vpop.permute.xlu1 %1715 }
 0xd6d   :  { %3961 = vpow2.f32 %v2183_v59  ;;  %v2223_v12 = vpack.c.bf16 %v1716_v3, %v1716_v3 }
 0xd6f   :  { %v3960_v58 = vpop.eup %3959  ;;  %v2505_v28 = vsel %vm766_vm3, %v2223_v12, 0 }
 0xd70   :  { %v2200_v27 = vsel %vm674_vm7, %v3960_v58, 0.0  ;;  %v2214_v61 = vpack.c.bf16 %v3960_v58, %v3960_v58 }
 0xd71   :  { %2201 = vadd.xlane.f32.xlu0 %v2200_v27 }
 0xd72   :  { %3724 = vmatmul.mubr.msk.bf16.vlgmr.msra.gmra.mrb[72].mxu1 %vm674_vm7, %v2214_v61 }
 0xd73   :  { %3735 = vmatprep.mubr.msk.bf16.mxu1 %vm4043_vm1, %v4039_v23 }
 0xd75   :  { %2195 = vadd.xlane.f32.xlu0 %v2194_v62 }
 0xd77   :  { %v3962_v18 = vpop.eup %3961 }
 0xd78   :  { %v2216_v63 = vpack.c.bf16 %v3962_v18, %v3962_v18  ;;  %v2206_v21 = vsel %vm674_vm7, %v3962_v18, 0.0 }
 0xd79   :  { %2186 = vadd.xlane.f32.xlu0 %v2185_v0 }
 0xd89   :  { %v2151_v60 = vpop.xlane.xlu0 %2150 }
 0xd8a   :  { %v2165_v6 = vsub.f32 %v4684_v29, %v2151_v60 }
 0xd8c   :  { %v2177_v7 = vmul.f32 1.442695, %v2165_v6 }
 0xd8d   :  { %v2157_v8 = vpop.xlane.xlu0 %2156 }
 0xd8e   :  { %3963 = vpow2.f32 %v2177_v7  ;;  %v2167_v1 = vsub.f32 %v4693_v33, %v2157_v8 }
 0xd90   :  { %v2181_v45 = vmul.f32 1.442695, %v2167_v1  ;;  %v3887_v1 = vld [vmem:[%s4919_s5 + $0x30] sm:$0xff]  }
 0xd91   :  { %v1719_v36 = vpop.permute.xlu0 %1718 }
 0xd92   :  { %3965 = vpow2.f32 %v2181_v45  ;;  %v2224_v11 = vpack.c.bf16 %v1719_v36, %v1719_v36 }
 0xd94   :  { %v2551_v20 = vsel %vm766_vm3, %v2224_v11, 0  ;;  %v3888_v11 = vld [vmem:[%s4919_s5 + $0x38] sm:$0xff]   ;;  %s3378_s5 = sld [smem:[#allocation3 + $0x1]] }
 0xd95   :  { %3734 = vmatpush3.bf16.msra.mxu1 %v2551_v20 }
 0xd96   :  { %3751 = vmatprep.subr.bf16.mxu1 %v4039_v23 }
 0xd98   :  { %v3964_v15 = vpop.eup %3963  ;;  %3736 = vmatmul.mubr.msk.bf16.vlgmr.msra.gmra.mrb[76].mxu1 %vm674_vm7, %v2216_v63 }
 0xd99   :  { %v2213_v24 = vpack.c.bf16 %v3964_v15, %v3964_v15  ;;  %3759 = vmatprep.mubr.msk.bf16.mxu1 %vm4043_vm1, %v4039_v23  ;;  %v2197_v29 = vsel %vm674_vm7, %v3964_v15, 0.0 }
 0xd9b   :  { %3718 = vmatmul.mubr.msk.bf16.vlgmr.msra.gmra.mrb[60].mxu0 %vm674_vm7, %v2213_v24 }
 0xd9c   :  { %v3966_v19 = vpop.eup %3965  ;;  %3728 = vmatpush3.bf16.msra.mxu0 %v2505_v28  ;;  %3729 = vmatprep.mubr.msk.bf16.mxu0 %vm4043_vm1, %v4039_v23 }
 0xd9d   :  { %v2203_v22 = vsel %vm674_vm7, %v3966_v19, 0.0  ;;  %3739 = vmatprep.subr.bf16.mxu0 %v4039_v23  ;;  %v2215_v30 = vpack.c.bf16 %v3966_v19, %v3966_v19 }
 0xd9e   :  { %2204 = vadd.xlane.f32.xlu1 %v2203_v22 }
 0xda2   :  { %2207 = vadd.xlane.f32.xlu1 %v2206_v21 }
 0xda3   :  { %3730 = vmatmul.mubr.msk.bf16.vlgmr.msra.gmra.mrb[64].mxu0 %vm674_vm7, %v2215_v30 }
 0xda4   :  { %3747 = vmatprep.mubr.msk.bf16.mxu0 %vm4043_vm1, %v4039_v23  ;;  %3740 = vmatpush3.bf16.msra.mxu0 %v3885_v35 }
 0xda5   :  { %3741 = vmatprep.subr.bf16.mxu0 %v4039_v23 }
 0xda6   :  { %2198 = vadd.xlane.f32.xlu1 %v2197_v29 }
 0xda8   :  { %3742 = vmatpush3.bf16.msra.mxu0 %v3886_v13 }
 0xda9   :  { %3743 = vmatprep.subr.bf16.mxu0 %v4039_v23 }
 0xdac   :  { %3744 = vmatpush3.bf16.msra.mxu0 %v3887_v1 }
 0xdad   :  { %3745 = vmatprep.subr.bf16.mxu0 %v4039_v23 }
 0xdb0   :  { %3746 = vmatpush3.bf16.msra.mxu0 %v3888_v11 }
 0xdb1   :  { %3763 = vmatprep.subr.bf16.mxu0 %v4039_v23 }
 0xdcc   :  { %v4747_v31 = vpop.f32.mrb[52].mxu0 }
 0xdcd   :  { %v3695_v32 = vpop.f32.mrb[53].mxu0 }
 0xdce   :  { %v2268_v33 = vpop.f32.mrb[54].mxu0 }
 0xdcf   :  { %v3696_v9 = vpop.f32.mrb[55].mxu0 }
 0xdee   :  { %v2190_v41 = vpop.xlane.xlu1 %2189 }
 0xdef   :  { %3967 = vrcp.f32 %v2190_v41 }
 0xdf2   :  { %v2193_v34 = vpop.xlane.xlu0 %2192 }
 0xdf9   :  { %v3968_v17 = vpop.eup %3967 }
 0xdfe   :  { %v2202_v43 = vpop.xlane.xlu0 %2201 }
 0xdff   :  { %3969 = vrcp.f32 %v2202_v43 }
 0xe02   :  { %v2196_v25 = vpop.xlane.xlu0 %2195 }
 0xe03   :  { %3971 = vrcp.f32 %v2196_v25 }
 0xe06   :  { %v2187_v22 = vpop.xlane.xlu0 %2186 }
 0xe09   :  { %v3970_v51 = vpop.eup %3969 }
 0xe0d   :  { %v3972_v27 = vpop.eup %3971 }
 0xe2b   :  { %v2205_v54 = vpop.xlane.xlu1 %2204 }
 0xe2f   :  { %v2208_v58 = vpop.xlane.xlu1 %2207 }
 0xe30   :  { %3973 = vrcp.f32 %v2208_v58 }
 0xe31   :  { %3975 = vrcp.f32 %v2193_v34 }
 0xe32   :  { %3977 = vrcp.f32 %v2205_v54 }
 0xe33   :  { %v2199_v21 = vpop.xlane.xlu1 %2198  ;;  %3979 = vrcp.f32 %v2187_v22 }
 0xe34   :  { %3981 = vrcp.f32 %v2199_v21  ;;  %v3893_v21 = vld [vmem:[%s4925_s11 + $0x40] sm:$0xff]  }
 0xe35   :  { %v2311_v39 = vpop.f32.mrb[64].mxu1 }
 0xe36   :  { %v3701_v40 = vpop.f32.mrb[65].mxu1  ;;  %v2602_v53 = vmul.f32 %v3968_v17, %v2311_v39 }
 0xe37   :  { %v2314_v42 = vpop.f32.mrb[66].mxu1 }
 0xe38   :  { %v3702_v46 = vpop.f32.mrb[67].mxu1 }
 0xe39   :  { %v2357_v47 = vpop.f32.mrb[56].mxu0 }
 0xe3a   :  { %v3707_v48 = vpop.f32.mrb[57].mxu0  ;;  %v3974_v61 = vpop.eup %3973 }
 0xe3b   :  { %v2360_v49 = vpop.f32.mrb[58].mxu0  ;;  %v3976_v18 = vpop.eup %3975 }
 0xe3c   :  { %v3708_v10 = vpop.f32.mrb[59].mxu0  ;;  %v3978_v3 = vpop.eup %3977  ;;  %v2603_v63 = vmul.f32 %v3976_v18, %v2357_v47 }
 0xe3d   :  { %v2403_v50 = vpop.f32.mrb[68].mxu1  ;;  %v3980_v29 = vpop.eup %3979 }
 0xe3e   :  { %v3713_v14 = vpop.f32.mrb[69].mxu1  ;;  %v2604_v0 = vmul.f32 %v3972_v27, %v2403_v50  ;;  %v3982_v34 = vpop.eup %3981  ;;  %v2601_v42 = vmul.f32 %v3980_v29, %v4747_v31  ;;  %v3321_v31 = vld [vmem:[%s4920_s6 + $0x1] ss:$0 sm:$0xff]  ;;  %v3895_v29 = vld [vmem:[%s4925_s11 + $0x50] sm:$0xff]   ;;  %s3223_s6 = scalar_lea.vmem [#allocation2], %s3378_s5 }
 0xe3f   :  { %v2406_v5 = vpop.f32.mrb[70].mxu1 }
 0xe40   :  { %v3714_v44 = vpop.f32.mrb[71].mxu1 }
 0xe45   :  { %v2495_v52 = vpop.f32.mrb[72].mxu1 }
 0xe46   :  { %v2606_v55 = vmul.f32 %v3970_v51, %v2495_v52  ;;  %v3725_v56 = vpop.f32.mrb[73].mxu1 }
 0xe47   :  { %v2498_v57 = vpop.f32.mrb[74].mxu1 }
 0xe48   :  { %v3830_v16 = vpack.i.bf16 %v2606_v55, %v2602_v53  ;;  %v3726_v26 = vpop.f32.mrb[75].mxu1 }
 0xe4a   :  { %3831 = vrot.lane.b32.xlu0 %v3830_v16, %s4948_s1 }
 0xe6b   :  { %v2587_v62 = vpop.f32.mrb[76].mxu1 }
 0xe6c   :  { %v2608_v4 = vmul.f32 %v3974_v61, %v2587_v62  ;;  %v3737_v2 = vpop.f32.mrb[77].mxu1 }
 0xe6d   :  { %v2590_v59 = vpop.f32.mrb[78].mxu1  ;;  %v3890_v2 = vld [vmem:[%s4923_s9 + $0x28] sm:$0xff]  }
 0xe6e   :  { %v3840_v60 = vpack.i.bf16 %v2608_v4, %v2604_v0  ;;  %v2449_v6 = vpop.f32.mrb[60].mxu0  ;;  %v3738_v7 = vpop.f32.mrb[79].mxu1  ;;  %v3891_v59 = vld [vmem:[%s4923_s9 + $0x30] sm:$0xff]  }
 0xe6f   :  { %v3719_v8 = vpop.f32.mrb[61].mxu0  ;;  %v2605_v41 = vmul.f32 %v3982_v34, %v2449_v6  ;;  %v3899_v34 = vld [vmem:[%s4925_s11 + $0x70] sm:$0xff]  }
 0xe70   :  { %v2452_v45 = vpop.f32.mrb[62].mxu0 }
 0xe71   :  { %v3720_v36 = vpop.f32.mrb[63].mxu0 }
 0xe76   :  { %v2541_v20 = vpop.f32.mrb[64].mxu0 }
 0xe77   :  { %v2607_v12 = vmul.f32 %v3978_v3, %v2541_v20  ;;  %v3731_v15 = vpop.f32.mrb[65].mxu0  ;;  %v3329_v3 = vld [vmem:[%s4921_s7 + $0x1] ss:$0 sm:$0xff] }
 0xe78   :  { %v2544_v24 = vpop.f32.mrb[66].mxu0  ;;  %v3330_v15 = vld [vmem:[%s4922_s8 + $0x1] ss:$0 sm:$0xff] }
 0xe79   :  { %v3835_v28 = vpack.i.bf16 %v2607_v12, %v2603_v63  ;;  %v3732_v19 = vpop.f32.mrb[67].mxu0 }
 0xe7b   :  { %3836 = vrot.lane.b32.xlu1 %v3835_v28, %s4949_s22 }
 0xe7f   :  { %3841 = vrot.lane.b32.xlu1 %v3840_v60, %s4950_s25  ;;  %v3892_v60 = vld [vmem:[%s4923_s9 + $0x38] sm:$0xff]  }
 0xebc   :  { %v3832_v30 = vpop.permute.xlu0 %3831 }
 0xebd   :  { %v3834_v33 = vunpack.i.h.bf16 %v3832_v30  ;;  %v3833_v9 = vunpack.i.l.bf16 %v3832_v30  ;;  %v3894_v30 = vld [vmem:[%s4925_s11 + $0x48] sm:$0xff]  }
 0xebf   :  { %v2621_v46 = vsel %vm268_vm2, %v2601_v42, %v3833_v9  ;;  %v2636_v47 = vsel %vm268_vm2, %v2605_v41, %v3834_v33  ;;  %v3897_v33 = vld [vmem:[%s4925_s11 + $0x60] sm:$0xff]   ;;  %v3898_v9 = vld [vmem:[%s4925_s11 + $0x68] sm:$0xff]  }
 0xeed   :  { %v3837_v32 = vpop.permute.xlu1 %3836 }
 0xeee   :  { %v3839_v39 = vunpack.i.h.bf16 %v3837_v32  ;;  %v3838_v40 = vunpack.i.l.bf16 %v3837_v32  ;;  %v3896_v32 = vld [vmem:[%s4925_s11 + $0x58] sm:$0xff]  }
 0xef0   :  { %v2637_v10 = vsel %vm1161_vm11, %v2636_v47, %v3839_v39  ;;  %v2622_v50 = vsel %vm1161_vm11, %v2621_v46, %v3838_v40  ;;  %v3900_v39 = vld [vmem:[%s4925_s11 + $0x78] sm:$0xff]   ;;  %v3340_v40 = vld [vmem:[%s4924_s10 + $0x1] ss:$0 sm:$0xff] }
 0xef1   :  { %v3842_v43 = vpop.permute.xlu1 %3841 }
 0xef2   :  { %v3844_v48 = vunpack.i.h.bf16 %v3842_v43  ;;  %v3843_v49 = vunpack.i.l.bf16 %v3842_v43 }
 0xef4   :  { %v2623_v14 = vsel %vm1163_vm12, %v2622_v50, %v3843_v49  ;;  %v2638_v5 = vsel %vm1163_vm12, %v2637_v10, %v3844_v48 }
 0xef5   :  { %v2648_v35 = vpack.c.bf16 %v2638_v5, %v2623_v14 }
 0xef7   :  { %3748 = vmatmul.mubr.msk.bf16.vlgmr.msra.gmra.mrb[68].mxu0 %vm170_vm0, %v2648_v35 }
 0xef8   :  { %3779 = vmatprep.mubr.msk.bf16.mxu0 %vm4043_vm1, %v4039_v23  ;;  %3764 = vmatpush3.bf16.msra.mxu0 %v3893_v21 }
 0xef9   :  { %3765 = vmatprep.subr.bf16.mxu0 %v4039_v23 }
 0xefc   :  { %3766 = vmatpush3.bf16.msra.mxu0 %v3894_v30 }
 0xefd   :  { %3767 = vmatprep.subr.bf16.mxu0 %v4039_v23 }
 0xf00   :  { %3768 = vmatpush3.bf16.msra.mxu0 %v3895_v29 }
 0xf01   :  { %3769 = vmatprep.subr.bf16.mxu0 %v4039_v23 }
 0xf04   :  { %3770 = vmatpush3.bf16.msra.mxu0 %v3896_v32  ;;  %v3374_v32 = vld [vmem:[%s4927_s13 + $0x1] ss:$0 sm:$0xff]  ;;  %s3390_s13 = scalar_lea.vmem [#allocation2], %s3042_s3 }
 0xf05   :  { %3771 = vmatprep.subr.bf16.mxu0 %v4039_v23 }
 0xf08   :  { %3772 = vmatpush3.bf16.msra.mxu0 %v3897_v33 }
 0xf09   :  { %3773 = vmatprep.subr.bf16.mxu0 %v4039_v23 }
 0xf0c   :  { %3774 = vmatpush3.bf16.msra.mxu0 %v3898_v9 }
 0xf0d   :  { %3775 = vmatprep.subr.bf16.mxu0 %v4039_v23 }
 0xf10   :  { %3776 = vmatpush3.bf16.msra.mxu0 %v3899_v34  ;;  %v3375_v34 = vld [vmem:[%s4928_s14 + $0x1] ss:$0 sm:$0xff] }
 0xf11   :  { %3777 = vmatprep.subr.bf16.mxu0 %v4039_v23 }
 0xf14   :  { %3778 = vmatpush3.bf16.msra.mxu0 %v3900_v39 }
 0xfca   :  { %v2718_v44 = vpop.f32.mrb[68].mxu0 }
 0xfcb   :  { %v2719_v13 = vadd.f32 %v3321_v31, %v2718_v44  ;;  %v3749_v17 = vpop.f32.mrb[69].mxu0 }
 0xfcc   :  { %v2721_v51 = vpop.f32.mrb[70].mxu0 }
 0xfcd   :  { %v2722_v52 = vadd.f32 %v3321_v31, %v2721_v51  ;;  %v3750_v53 = vpop.f32.mrb[71].mxu0  ;;  %v2725_v55 = vadd.f32 %v2719_v13, %v4568_v37 }
 0xfcf   :  { %v2731_v56 = vsel %vm170_vm0, %v2725_v55, 0.0  ;;  %v2726_v57 = vadd.f32 %v2722_v52, %v4570_v38  ;;  %v3889_v38 = vld [vmem:[%s4923_s9 + $0x20] sm:$0xff]  }
 0xfd0   :  { %2732 = vadd.xlane.f32.xlu0 %v2731_v56  ;;  %3752 = vmatpush3.bf16.msra.mxu1 %v3889_v38 }
 0xfd1   :  { %v2734_v16 = vsel %vm170_vm0, %v2726_v57, 0.0  ;;  %3753 = vmatprep.subr.bf16.mxu1 %v4039_v23 }
 0xfd2   :  { %2735 = vadd.xlane.f32.xlu1 %v2734_v16 }
 0xfd4   :  { %3754 = vmatpush3.bf16.msra.mxu1 %v3890_v2 }
 0xfd5   :  { %3755 = vmatprep.subr.bf16.mxu1 %v4039_v23 }
 0xfd8   :  { %3756 = vmatpush3.bf16.msra.mxu1 %v3891_v59 }
 0xfd9   :  { %3757 = vmatprep.subr.bf16.mxu1 %v4039_v23 }
 0xfdc   :  { %3758 = vmatpush3.bf16.msra.mxu1 %v3892_v60 }
 0xfdd   :  { %3783 = vmatprep.subr.bf16.mxu1 %v4039_v23 }
0x105d   :  { %v2733_v26 = vpop.xlane.xlu0 %2732 }
0x105e   :  { %v2737_v54 = vmul.f32 0.015625, %v2733_v26 }
0x105f   :  { %v2736_v25 = vpop.xlane.xlu1 %2735 }
0x1060   :  { %v2739_v58 = vsub.f32 %v2725_v55, %v2737_v54  ;;  %v2738_v27 = vmul.f32 0.015625, %v2736_v25  ;;  %v3363_v25 = vld [vmem:[%s4926_s12 + $0x1] ss:$0 sm:$0xff] }
0x1062   :  { %v2740_v61 = vsub.f32 %v2726_v57, %v2738_v27  ;;  %v2741_v62 = vmul.f32 %v2739_v58, %v2739_v58 }
0x1064   :  { %v2743_v0 = vsel %vm170_vm0, %v2741_v62, 0.0  ;;  %v2742_v4 = vmul.f32 %v2740_v61, %v2740_v61 }
0x1065   :  { %2744 = vadd.xlane.f32.xlu0 %v2743_v0 }
0x1066   :  { %v2746_v37 = vsel %vm170_vm0, %v2742_v4, 0.0 }
0x1069   :  { %2747 = vadd.xlane.f32.xlu0 %v2746_v37 }
0x10f2   :  { %v2745_v6 = vpop.xlane.xlu0 %2744 }
0x10f3   :  { %v2749_v7 = vmul.f32 0.015625, %v2745_v6 }
0x10f5   :  { %v2751_v8 = vadd.f32 1e-05, %v2749_v7 }
0x10f6   :  { %v2748_v1 = vpop.xlane.xlu0 %2747 }
0x10f7   :  { %3983 = vrsqrt.f32 %v2751_v8  ;;  %v2750_v45 = vmul.f32 0.015625, %v2748_v1 }
0x10f9   :  { %v2752_v36 = vadd.f32 1e-05, %v2750_v45 }
0x10fb   :  { %3985 = vrsqrt.f32 %v2752_v36 }
0x1101   :  { %v3984_v11 = vpop.eup %3983 }
0x1102   :  { %v2755_v18 = vmul.f32 %v3984_v11, %v2739_v58 }
0x1104   :  { %v2763_v63 = vmul.f32 %v3329_v3, %v2755_v18 }
0x1105   :  { %v3986_v20 = vpop.eup %3985 }
0x1106   :  { %v2756_v12 = vmul.f32 %v3986_v20, %v2740_v61  ;;  %v4809_v28 = vadd.f32 %v3330_v15, %v2763_v63  ;;  %v3901_v20 = vld [vmem:[%s4929_s15] sm:$0xff]   ;;  %v3902_v63 = vld [vmem:[%s4929_s15 + $0x8] sm:$0xff]  }
0x1108   :  { %v2764_v24 = vmul.f32 %v3329_v3, %v2756_v12  ;;  %v3903_v12 = vld [vmem:[%s4929_s15 + $0x10] sm:$0xff]  }
0x110a   :  { %v4811_v19 = vadd.f32 %v3330_v15, %v2764_v24  ;;  %v3904_v15 = vld [vmem:[%s4929_s15 + $0x18] sm:$0xff]  }
0x110c   :  { %v2782_v22 = vpack.c.bf16 %v4811_v19, %v4809_v28 }
0x110e   :  { %3760 = vmatmul.mubr.msk.bf16.vlgmr.msra.gmra.mrb[80].mxu1 %vm170_vm0, %v2782_v22 }
0x110f   :  { %3791 = vmatprep.mubr.msk.bf16.mxu1 %vm4043_vm1, %v4039_v23  ;;  %3784 = vmatpush3.bf16.msra.mxu1 %v3901_v20 }
0x1110   :  { %3785 = vmatprep.subr.bf16.mxu1 %v4039_v23 }
0x1113   :  { %3786 = vmatpush3.bf16.msra.mxu1 %v3902_v63 }
0x1114   :  { %3787 = vmatprep.subr.bf16.mxu1 %v4039_v23 }
0x1117   :  { %3788 = vmatpush3.bf16.msra.mxu1 %v3903_v12 }
0x1118   :  { %3789 = vmatprep.subr.bf16.mxu1 %v4039_v23 }
0x111b   :  { %3790 = vmatpush3.bf16.msra.mxu1 %v3904_v15 }
0x111c   :  { %3795 = vmatprep.subr.bf16.mxu1 %v4039_v23 }
0x11e1   :  { %v2852_v41 = vpop.f32.mrb[80].mxu1 }
0x11e2   :  { %v2853_v42 = vadd.f32 %v3340_v40, %v2852_v41  ;;  %v3761_v43 = vpop.f32.mrb[81].mxu1 }
0x11e3   :  { %v2855_v46 = vpop.f32.mrb[82].mxu1 }
0x11e4   :  { %v2859_v47 = vmul.f32 %v2853_v42, %v2853_v42  ;;  %v2856_v48 = vadd.f32 %v3340_v40, %v2855_v46  ;;  %v3762_v49 = vpop.f32.mrb[83].mxu1 }
0x11e6   :  { %v2861_v10 = vmul.f32 %v2859_v47, %v2853_v42  ;;  %v2860_v50 = vmul.f32 %v2856_v48, %v2856_v48 }
0x11e8   :  { %v2863_v14 = vmul.f32 0.044715, %v2861_v10  ;;  %v2862_v5 = vmul.f32 %v2860_v50, %v2856_v48  ;;  %v3905_v50 = vld [vmem:[%s4931_s17] sm:$0xff]  }
0x11ea   :  { %v2865_v35 = vadd.f32 %v2863_v14, %v2853_v42  ;;  %v2864_v31 = vmul.f32 0.044715, %v2862_v5  ;;  %v3906_v14 = vld [vmem:[%s4931_s17 + $0x8] ss:$0 sps:$4 sm:$0xff]   ;;  %s4048_s17 = smov [#allocation6]  }
0x11eb   :  { %v3164_v5 = vsel %vm766_vm3, %v3906_v14, 0  ;;  %s3213_s21 = sshll.u32 %s4048_s17, 4  ;;  %s3214_s21 = int_to_ptr.vmem [resolvable:$true] %s3213_s21 }
0x11ec   :  { %v2867_v44 = vmul.f32 0.7978846, %v2865_v35  ;;  %v2866_v13 = vadd.f32 %v2864_v31, %v2856_v48  ;;  %v3380_v35 = vld [vmem:[%s4930_s16] ss:$0 sm:$0xff]  ;;  %s4011_s16 = scalar_lea.vmem %s3214_s21, 32  ;;  %p4016_p6 = scmp.lt.s32.totalorder %s3214_s21, %s3214_s21 }
0x11ed   :  { %p4012_p5 = scmp.ne.s32.totalorder %s3214_s21, %s4011_s16  ;;  %p4017_p7 = scmp.lt.s32.totalorder %s4011_s16, %s4011_s16 }
0x11ee   :  { %3987 = vtanh.f32 %v2867_v44  ;;  %v2868_v17 = vmul.f32 0.7978846, %v2866_v13 }
0x11ef   :  { %p4018_p8 = por %p4017_p7, %p4016_p6 }
0x11f0   :  { %3989 = vtanh.f32 %v2868_v17 }
0x11f1   :  { %p4019_p9 = pnand %p4018_p8, %p4012_p5 }
0x11f8   :  { %v3988_v51 = vpop.eup %3987 }
0x11f9   :  { %v2871_v52 = vadd.f32 1.0, %v3988_v51 }
0x11fa   :  { %v3990_v53 = vpop.eup %3989 }
0x11fb   :  { %v2873_v55 = vmul.f32 0.5, %v2871_v52  ;;  %v2872_v56 = vadd.f32 1.0, %v3990_v53  ;;  %v3386_v53 = vld [vmem:[%s4932_s18] ss:$0 sm:$0xff] }
0x11fd   :  { %v2874_v57 = vmul.f32 0.5, %v2872_v56  ;;  %v2875_v16 = vmul.f32 %v2873_v55, %v2853_v42 }
0x11ff   :  { %v2876_v26 = vmul.f32 %v2874_v57, %v2856_v48 }
0x1201   :  { %v2894_v54 = vpack.c.bf16 %v2876_v26, %v2875_v16 }
0x1203   :  { %3780 = vmatmul.mubr.bf16.vlgmr.msra.gmra.mrb[72].mxu0 %v2894_v54 }
0x12d6   :  { %v2985_v58 = vpop.f32.mrb[72].mxu0 }
0x12d7   :  { %v2986_v27 = vadd.f32 %v3363_v25, %v2985_v58  ;;  %v3781_v61 = vpop.f32.mrb[73].mxu0 }
0x12d8   :  { %v2988_v62 = vpop.f32.mrb[74].mxu0 }
0x12d9   :  { %v2989_v0 = vadd.f32 %v3363_v25, %v2988_v62  ;;  %v3782_v4 = vpop.f32.mrb[75].mxu0  ;;  %v2992_v37 = vadd.f32 %v2986_v27, %v4809_v28 }
0x12db   :  { %v2998_v38 = vsel %vm170_vm0, %v2992_v37, 0.0  ;;  %v2993_v2 = vadd.f32 %v2989_v0, %v4811_v19 }
0x12dc   :  { %2999 = vadd.xlane.f32.xlu1 %v2998_v38 }
0x12dd   :  { %v3001_v59 = vsel %vm170_vm0, %v2993_v2, 0.0 }
0x12de   :  { %3002 = vadd.xlane.f32.xlu0 %v3001_v59 }
0x1369   :  { %v3000_v60 = vpop.xlane.xlu1 %2999 }
0x136a   :  { %v3004_v6 = vmul.f32 0.015625, %v3000_v60 }
0x136b   :  { %v3003_v7 = vpop.xlane.xlu0 %3002 }
0x136c   :  { %v3006_v8 = vsub.f32 %v2992_v37, %v3004_v6  ;;  %v3005_v1 = vmul.f32 0.015625, %v3003_v7 }
0x136e   :  { %v3007_v45 = vsub.f32 %v2993_v2, %v3005_v1  ;;  %v3008_v36 = vmul.f32 %v3006_v8, %v3006_v8 }
0x1370   :  { %v3010_v11 = vsel %vm170_vm0, %v3008_v36, 0.0  ;;  %v3009_v18 = vmul.f32 %v3007_v45, %v3007_v45 }
0x1371   :  { %3011 = vadd.xlane.f32.xlu1 %v3010_v11 }
0x1372   :  { %v3013_v3 = vsel %vm170_vm0, %v3009_v18, 0.0 }
0x1373   :  { %3014 = vadd.xlane.f32.xlu0 %v3013_v3 }
0x13fe   :  { %v3012_v24 = vpop.xlane.xlu1 %3011 }
0x13ff   :  { %v3016_v28 = vmul.f32 0.015625, %v3012_v24 }
0x1400   :  { %v3015_v19 = vpop.xlane.xlu0 %3014 }
0x1401   :  { %v3018_v22 = vadd.f32 1e-05, %v3016_v28  ;;  %v3017_v21 = vmul.f32 0.015625, %v3015_v19 }
0x1403   :  { %3991 = vrsqrt.f32 %v3018_v22  ;;  %v3019_v30 = vadd.f32 1e-05, %v3017_v21 }
0x1405   :  { %3993 = vrsqrt.f32 %v3019_v30 }
0x140d   :  { %v3992_v29 = vpop.eup %3991 }
0x140e   :  { %v3022_v33 = vmul.f32 %v3992_v29, %v3006_v8 }
0x140f   :  { %v3994_v9 = vpop.eup %3993 }
0x1410   :  { %v3030_v39 = vmul.f32 %v3374_v32, %v3022_v33  ;;  %v3023_v40 = vmul.f32 %v3994_v9, %v3007_v45 }
0x1412   :  { %v3038_v41 = vadd.f32 %v3375_v34, %v3030_v39  ;;  %v3031_v42 = vmul.f32 %v3374_v32, %v3023_v40 }
0x1414   :  { %3040 = vst.msk [vmem:[#allocation2] sm:$0xff] %vm170_vm0, %v3038_v41  ;;  %v3039_v43 = vadd.f32 %v3375_v34, %v3031_v42 }
0x1416   :  { %3041 = vst.msk [vmem:[#allocation2 + $0x8] sm:$0xff] %vm170_vm0, %v3039_v43 }
0x141d   :  { %v3379_v46 = vld [vmem:[%s3223_s6 + $0x7] sm:$0x1]  ;;  %v3392_v48 = vld [vmem:[%s3390_s13 - $0x1] sm:$0x1] }
0x141e   :  { %v3051_v47 = vrot.slane %v3379_v46, 7 }
0x1420   :  { %v3054_v49 = vsel %vm3053_vm13, %v3392_v48, %v3051_v47 }
0x1421   :  { %v3063_v10 = vpack.c.bf16 %v3054_v49, %v3054_v49 }
0x1423   :  { %3792 = vmatmul.mubr.msk.bf16.vlgmr.msra.gmra.mrb[84].mxu1 %vm170_vm0, %v3063_v10 }
0x1424   :  { %3799 = vmatprep.mubr.msk.bf16.mxu1 %vm4043_vm1, %v4039_v23  ;;  %3796 = vmatpush3.bf16.msra.mxu1 %v3905_v50 }
0x1425   :  { %3797 = vmatprep.subr.bf16.mxu1 %v4039_v23 }
0x1428   :  { %3798 = vmatpush3.bf16.msra.mxu1 %v3164_v5 }
0x14f6   :  { %v3132_v31 = vpop.f32.mrb[84].mxu1 }
0x14f7   :  { %v3133_v44 = vadd.f32 %v3380_v35, %v3132_v31  ;;  %v3793_v13 = vpop.f32.mrb[85].mxu1 }
0x14f8   :  { %v3135_v17 = vpop.f32.mrb[86].mxu1 }
0x14f9   :  { %3995 = vtanh.f32 %v3133_v44  ;;  %v3794_v51 = vpop.f32.mrb[87].mxu1 }
0x1503   :  { %v3996_v52 = vpop.eup %3995 }
0x1504   :  { %v3142_v23 = vpack.c.bf16 %v3996_v52, %v3996_v52 }
0x1506   :  { %3800 = vmatmul.mubr.msk.bf16.vlgmr.msra.gmra.mrb[88].mxu1 %vm3159_vm14, %v3142_v23 }
0x15d9   :  { %v3200_v55 = vpop.f32.mrb[88].mxu1 }
0x15da   :  { %v3201_v56 = vadd.f32 %v3386_v53, %v3200_v55  ;;  %v3801_v57 = vpop.f32.mrb[89].mxu1 }
0x15db   :  { %v3203_v16 = vpop.f32.mrb[90].mxu1 }
0x15dc   :  { %3206 = vst [vmem:[#allocation6] sm:$0x3] %v3201_v56  ;;  %v3802_v26 = vpop.f32.mrb[91].mxu1 }
0x15dd   :  { %4022 = shalt.err (!%p4019_p9)
}
0x15de   :  { %s4023_s18 = scalar_lea.hbm %s4933_s19, 32 }
0x15df   :  { %p4024_p10 = scmp.ne.s32.totalorder %s4933_s19, %s4023_s18  ;;  %p4027_p11 = scmp.lt.u32.totalorder %s4023_s18, %s4933_s19 }
0x15e1   :  { %p4029_p12 = pnand %p4027_p11, %p4024_p10 }
0x15e3   :  { %4032 = shalt.err (!%p4029_p12)
}
0x15e4   :  { %3216 = dma.vmem_to_hbm [thread:$0]  %s3214_s21, 32, %s4933_s19, [#allocation4]  }
0x15e5   :  { %4035 = dma.done.wait [#allocation4], 32  }
0x15e6   :  { %4036 = vsyncadd [#allocation4], 4294967264 }
0x15e7   :  { %3220 = vsyncpa [#allocation4], 1 }
0x15e8   :  { %3221 = vsyncpa [#allocation5], 1 }

</bundles_post_ra>
